<compile_context>
chip_gen: v5e
topology: v5e:2x2
jax: 0.10.0
libtpu: 0.0.40
codegen_flags: <defaults>
</compile_context>

<pallas_src>
import jax
import jax.numpy as jnp
from jax.experimental import pallas as pl
from jax.experimental.pallas import tpu as pltpu


def spatial_attention_kernel(x_ref, w_ref, b_ref, o_ref):
    # x_ref: (C, N)   full flattened input, VMEM-resident across the grid
    # w_ref: (TC, C)  1x1-conv weight rows for this block of output channels
    # b_ref: (TC, 1)  bias for this block
    # o_ref: (TC, N)  output block
    tc = o_ref.shape[0]
    i = pl.program_id(0)

    # --- 1x1 conv == channel matmul on the MXU ---
    attn = jnp.dot(w_ref[...], x_ref[...],
                   preferred_element_type=jnp.float32) + b_ref[...]   # (TC, N)

    # --- fused softmax + max-normalization ---
    # softmax_j = e_j / s with e_j = exp(a_j - m), s = sum_j e_j, and
    # max_j softmax_j = 1/s, hence softmax / (max + eps) == e / (1 + eps * s).
    m = jnp.max(attn, axis=-1, keepdims=True)                          # (TC, 1) XLU
    e = jnp.exp(attn - m)                                              # (TC, N) EUP
    s = jnp.sum(e, axis=-1, keepdims=True)                             # (TC, 1) XLU
    # The reciprocal acts on a (TC, 1) column only, so exact vs. approx is
    # performance-irrelevant here; keep exact to stay within the 1e-4
    # reference tolerance.
    attn_norm = e * pl.reciprocal(1.0 + 1e-6 * s, approx=False)        # (TC, N)

    # --- modulate the matching block of input channels ---
    row0 = pl.multiple_of(i * tc, tc)
    x_blk = x_ref[pl.ds(row0, tc), :]
    o_ref[...] = (x_blk * attn_norm).astype(o_ref.dtype)


def spatial_attention(x, w, b):
    """x: (C, H, W) float32, w: (C, C) 1x1-conv weight, b: (C,). Returns (C, H, W)."""
    C, H, W = x.shape
    N = H * W
    x_flat = x.reshape(C, N)
    b_col = b.reshape(C, 1)

    # Channel tile: 128 output channels per grid step (parallel on v7x megacore).
    TC = 128 if C % 128 == 0 else C
    grid = (C // TC,)

    # The whole flattened input must stay VMEM-resident (single-pass softmax).
    # f32 footprint: x + 2x(w tile) + 2x(out tile); keep well below the
    # ~16 MiB default scoped-VMEM limit on v5e (and 64 MiB physical on v7x).
    resident_bytes = 4 * (C * N + 2 * TC * C + 2 * TC * N)
    if resident_bytes > 12 * 1024 * 1024:
        # TODO(synk): tile N with an online softmax (per-row m/s accumulators
        # in VMEM scratch) for very large spatial extents.
        raise ValueError("spatial extent too large for single-pass VMEM-resident kernel")

    out_flat = pl.pallas_call(
        spatial_attention_kernel,
        out_shape=jax.ShapeDtypeStruct((C, N), x.dtype),
        grid=grid,
        in_specs=[
            pl.BlockSpec((C, N), lambda i: (0, 0)),    # x: resident, DMA'd once
            pl.BlockSpec((TC, C), lambda i: (i, 0)),   # weight rows, double-buffered
            pl.BlockSpec((TC, 1), lambda i: (i, 0)),   # bias rows
        ],
        out_specs=pl.BlockSpec((TC, N), lambda i: (i, 0)),
        compiler_params=pltpu.CompilerParams(
            dimension_semantics=("parallel",),
        ),
    )(x_flat, w, b_col)

    return out_flat.reshape(C, H, W)


def spatial_attention_ref(x, w, b):
    """Pure-JAX reference mirroring the PyTorch forward."""
    C, H, W = x.shape
    attn = jnp.einsum("oc,chw->ohw", w, x) + b[:, None, None]   # 1x1 conv
    attn_flat = attn.reshape(C, -1)
    attn_soft = jax.nn.softmax(attn_flat, axis=-1)
    max_vals = jnp.max(attn_soft, axis=1, keepdims=True)
    attn_norm = attn_soft / (max_vals + 1e-6)
    return x * attn_norm.reshape(C, H, W)


if __name__ == "__main__":
    # Module spec is Conv2d(512, 512, kernel_size=1) on an unbatched (C, H, W)
    # input; use the full 512 channels with a small spatial extent.
    C, H, W = 512, 16, 16

    key = jax.random.PRNGKey(0)
    kx, kw, kb = jax.random.split(key, 3)

    x = jax.random.normal(kx, (C, H, W), dtype=jnp.float32)
    fan_in = float(C)
    w = jax.random.uniform(kw, (C, C), dtype=jnp.float32,
                           minval=-1.0, maxval=1.0) / jnp.sqrt(fan_in)
    b = jax.random.uniform(kb, (C,), dtype=jnp.float32,
                           minval=-1.0, maxval=1.0) / jnp.sqrt(fan_in)

    out = jax.block_until_ready(spatial_attention(x, w, b))

    ref = spatial_attention_ref(x, w, b)
    assert out.shape == (C, H, W)
    assert jnp.allclose(out, ref, atol=1e-4, rtol=1e-4), "mismatch vs reference"

    print("KERNEL_OK")
</pallas_src>

<mosaic_0001>
module attributes {stable_mosaic.version = 11 : i64} {
  func.func @spatial_attention_kernel(%arg0: i32, %arg1: memref<512x256xf32, #tpu.memory_space<vmem>>, %arg2: memref<128x512xf32, #tpu.memory_space<vmem>>, %arg3: memref<128x1xf32, #tpu.memory_space<vmem>>, %arg4: memref<128x256xf32, #tpu.memory_space<vmem>>) attributes {dimension_semantics = [#tpu.dimension_semantics<parallel>], iteration_bounds = array<i64: 4>, scalar_prefetch = 0 : i64, scratch_operands = 0 : i64, tpu.core_type = #tpu.core_type<tc>, window_params = [{pipeline_mode = #tpu.pipeline_mode<synchronous>, transform_indices = @transform_0, window_bounds = array<i64: 512, 256>}, {transform_indices = @transform_1, window_bounds = array<i64: 128, 512>}, {transform_indices = @transform_2, window_bounds = array<i64: 128, 1>}, {transform_indices = @transform_3, window_bounds = array<i64: 128, 256>}]} {
    %c0 = arith.constant 0 : index
    %c0_0 = arith.constant 0 : index
    %0 = vector.load %arg2[%c0, %c0_0] : memref<128x512xf32, #tpu.memory_space<vmem>>, vector<128x512xf32>
    %c0_1 = arith.constant 0 : index
    %c0_2 = arith.constant 0 : index
    %1 = vector.load %arg1[%c0_1, %c0_2] : memref<512x256xf32, #tpu.memory_space<vmem>>, vector<512x256xf32>
    %cst = arith.constant dense<0.000000e+00> : vector<128x256xf32>
    %2 = tpu.matmul %0, %1, %cst {dimension_numbers = #tpu.dot_dimension_numbers<[1], [0], [0], [1], [0, 0, 1, 1], [], []>} : vector<128x512xf32>, vector<512x256xf32>, vector<128x256xf32> -> vector<128x256xf32>
    %c0_3 = arith.constant 0 : index
    %c0_4 = arith.constant 0 : index
    %3 = vector.load %arg3[%c0_3, %c0_4] : memref<128x1xf32, #tpu.memory_space<vmem>>, vector<128x1xf32>
    %4 = vector.broadcast %3 : vector<128x1xf32> to vector<128x256xf32>
    %5 = arith.addf %2, %4 : vector<128x256xf32>
    %cst_5 = arith.constant dense<0xFF800000> : vector<128xf32>
    %6 = vector.multi_reduction <maximumf>, %5, %cst_5 [1] : vector<128x256xf32> to vector<128xf32>
    %7 = vector.shape_cast %6 : vector<128xf32> to vector<128x1xf32>
    %8 = vector.broadcast %7 : vector<128x1xf32> to vector<128x256xf32>
    %9 = arith.subf %5, %8 : vector<128x256xf32>
    %10 = math.exp %9 : vector<128x256xf32>
    %cst_6 = arith.constant dense<0.000000e+00> : vector<128xf32>
    %11 = vector.multi_reduction <add>, %10, %cst_6 [1] : vector<128x256xf32> to vector<128xf32>
    %12 = vector.shape_cast %11 : vector<128xf32> to vector<128x1xf32>
    %cst_7 = arith.constant 9.99999997E-7 : f32
    %13 = vector.broadcast %cst_7 : f32 to vector<128x1xf32>
    %14 = arith.mulf %13, %12 : vector<128x1xf32>
    %cst_8 = arith.constant 1.000000e+00 : f32
    %15 = vector.broadcast %cst_8 : f32 to vector<128x1xf32>
    %16 = arith.addf %15, %14 : vector<128x1xf32>
    %17 = tpu.reciprocal %16 : vector<128x1xf32> -> vector<128x1xf32>
    %18 = vector.broadcast %17 : vector<128x1xf32> to vector<128x256xf32>
    %19 = arith.mulf %10, %18 : vector<128x256xf32>
    %c128_i32 = arith.constant 128 : i32
    %20 = arith.muli %arg0, %c128_i32 : i32
    %21 = tpu.assume_multiple %20, 128 : i32
    %22 = arith.index_cast %21 : i32 to index
    %c0_9 = arith.constant 0 : index
    %23 = vector.load %arg1[%22, %c0_9] : memref<512x256xf32, #tpu.memory_space<vmem>>, vector<128x256xf32>
    %24 = arith.mulf %23, %19 : vector<128x256xf32>
    %c0_10 = arith.constant 0 : index
    %c0_11 = arith.constant 0 : index
    %25 = vector.load %arg4[%c0_10, %c0_11] : memref<128x256xf32, #tpu.memory_space<vmem>>, vector<128x256xf32>
    tpu.vector_store %arg4[%c0_10, %c0_11], %24 {strides = array<i32>} : memref<128x256xf32, #tpu.memory_space<vmem>>, vector<128x256xf32>,
    return
  }
  func.func @transform_0(%arg0: i32) -> (i32, i32) {
    %c0_i32 = arith.constant 0 : i32
    %c0_i32_0 = arith.constant 0 : i32
    %c0_i32_1 = arith.constant 0 : i32
    return %c0_i32, %c0_i32_0 : i32, i32
  }
  func.func @transform_1(%arg0: i32) -> (i32, i32) {
    %c0_i32 = arith.constant 0 : i32
    %c0_i32_0 = arith.constant 0 : i32
    return %arg0, %c0_i32 : i32, i32
  }
  func.func @transform_2(%arg0: i32) -> (i32, i32) {
    %c0_i32 = arith.constant 0 : i32
    %c0_i32_0 = arith.constant 0 : i32
    return %arg0, %c0_i32 : i32, i32
  }
  func.func @transform_3(%arg0: i32) -> (i32, i32) {
    %c0_i32 = arith.constant 0 : i32
    %c0_i32_0 = arith.constant 0 : i32
    return %arg0, %c0_i32 : i32, i32
  }
}

</mosaic_0001>

<bundles_post_ra>
// kernel: tpu_custom_call.1
= control target key start
LH: loop header
LB: loop body
LE: loop exit
PB: predicated region body
PF: predicated region fallthrough
CT: control target
= control target key end

     0   :  { %8 = vsyncpa [#allocation3], 0  ;;  %s2979_s0 = inlined_call_operand.hbm [shape: f32[512,256], index: 0, kind: input, shape index: {}]   ;;  %s2980_s1 = inlined_call_operand.hbm [shape: f32[512,512], index: 1, kind: input, shape index: {}]   ;;  %s2981_s2 = inlined_call_operand.vmem [shape: f32[512,1], index: 2, kind: input, shape index: {}]   ;;  %s2982_s3 = inlined_call_operand.hbm [shape: f32[512,256], index: 3, kind: output, shape index: {}]  }
   0x1   :  { %9 = vsyncpa [#allocation6], 0 }
   0x2   :  { %11 = vsyncpa [#allocation6 + $0x1], 0 }
   0x3   :  { %12 = vsyncpa [#allocation4], 0 }
   0x4   :  { %14 = vsyncpa [#allocation4 + $0x1], 0  ;;  %s2090_s12 = smov 0   ;;  %s2092_s13 = smov 0  }
   0x5   :  { %s2094_s14 = smov 0   ;;  %s2096_s15 = smov 0  }
   0x6 LB: > { %s2111_s16 = sadd.s32 4294967295, %s2060_s15   ;;  %s1739_s17 = sadd.s32 4294967294, %s2060_s15   ;;  %s2060_s15 = sphi %s2096_s15, %s3028_s15   ;;  %s2056_s14 = sphi %s2094_s14, %s3027_s14   ;;  %s2052_s13 = sphi %s2092_s13, %s3026_s13   ;;  %s2048_s12 = sphi %s2090_s12, %s3025_s12  }
   0x7   : > { %p61_p0 = scmp.ne.s32.totalorder %s2052_s13, %s2048_s12  ;;  %p62_p1 = scmp.eq.s32.totalorder %s2111_s16, 0 }
   0x8   : > { %p111_p2 = scmp.eq.s32.totalorder %s2111_s16, 3  ;;  %p117_p3 = scmp.eq.s32.totalorder %s1739_s17, 3 }
   0x9   : > { %p2120_p4 = por %p62_p1, %p61_p0  ;;  %p1740_p5 = scmp.ge.s32.totalorder %s2060_s15, 1 }
   0xa   : > { %p2125_p6 = por %p117_p3, %p61_p0  ;;  %p124_p7 = scmp.lt.s32.totalorder %s2060_s15, 5 }
   0xb   : > { %s135_s22 = sshll.u32 %s2979_s0, 4  ;;  %s2062_s24 = smov [#allocation2]   ;;  %s136_s22 = int_to_ptr.hbm [resolvable:$true] %s135_s22 }
   0xc   : > { %p2133_p8 = pnand %p1740_p5, %p124_p7  ;;  %s137_s25 = sshll.u32 %s2062_s24, 4  ;;  %s138_s25 = int_to_ptr.vmem [resolvable:$true] %s137_s25 }
   0xd   : > { %s2142_s26 = sadd.s32 1, %s2060_s15   ;;  %s2063_s27 = smov 256  }
   0xe   : > { %p1775_p9 = pneg %p2133_p8  ;;  %s2064_s28 = smov 16  }
   0xf   : > { %s45_s29 = ssub.s32 %s2060_s15, %s2142_s26  ;;  %s48_s30 = sadd.s32 1, %s2056_s14 }
  0x10   : > { %p1776_p10 = pnand %p1775_p9, %p62_p1  ;;  %p46_p11 = scmp.eq.s32.totalorder %s45_s29, 0 }
  0x11   : > { %p55_p12 = scmp.ne.s32.totalorder %s2056_s14, %s2052_s13  ;;  %p56_p13 = scmp.eq.s32.totalorder %s2060_s15, 0 }
  0x12   : > { %1778 = dma.hbm_to_vmem [thread:$0]  (!%p1776_p10), %s136_s22, 16384, %s138_s25, [#allocation3], %s2063_s27, %s2063_s27, %s2064_s28  }
  0x13   : > { %p1788_p0 = scmp.lt.s32.totalorder %s2060_s15, 4  ;;  %p57_p3 = por %p56_p13, %p55_p12 }
  0x14   : > { %s2152_s4 = scalar_select %p46_p11, %s2056_s14, %s48_s30  }
  0x15   : > { %p2156_p5 = por %p111_p2, %p55_p12  ;;  %s151_s6 = sand.u32 1, %s2056_s14  }
  0x16   : > { %s1763_s7 = sshll.u32 %s2060_s15, 9  ;;  %s1743_s8 = sshll.u32 %s151_s6, 9 }
  0x17   : > { %s161_s11 = scalar_lea.hbm %s2980_s1, %s1763_s7  ;;  %s155_s20 = scalar_lea.vmem [#allocation5], %s1743_s8 }
  0x18   : > { %s162_s17 = sshll.u32 %s161_s11, 4  ;;  %s164_s21 = sshll.u32 %s155_s20, 4  ;;  %s163_s17 = int_to_ptr.hbm [resolvable:$true] %s162_s17  ;;  %s165_s21 = int_to_ptr.vmem [resolvable:$true] %s164_s21 }
  0x19   : > { %p2167_p7 = pnand %p1788_p0, %p57_p3  ;;  %s152_s24 = scalar_lea.sflag [#allocation6], %s151_s6 }
  0x1a   : > { %s1960_s25 = sshra.s32 %s163_s17, 4  ;;  %s1967_s30 = scalar_lea.hbm %s2980_s1, 2048  ;;  %s1961_s25 = int_to_ptr.hbm [resolvable:$true] %s1960_s25 }
  0x1b   : > { %s1962_s27 = scalar_lea.hbm %s1961_s25, 512  ;;  %p1964_p9 = pneg %p2167_p7 }
  0x1c   : > { %p1963_p2 = scmp.ne.s32.totalorder %s1961_s25, %s1962_s27  ;;  %p1968_p12 = scmp.lt.s32.totalorder %s1961_s25, %s2980_s1 }
  0x1d   : > { %p1969_p13 = scmp.lt.s32.totalorder %s1967_s30, %s1962_s27 }
  0x1e   : > { %p1965_p10 = pnand %p1964_p9, %p1963_p2 }
  0x1f   : > { %p1970_p0 = por %p1969_p13, %p1968_p12 }
  0x20   : > { %p1966_p11 = pneg %p1965_p10 }
  0x22   : > { %p1971_p3 = pnand %p1970_p0, %p1966_p11 }
  0x24   : > { %1974 = shalt.err (!%p1971_p3)
}
  0x25   : > { %s2065_s6 = smov 512   ;;  %s2066_s9 = smov 32  }
  0x26   : > { %1782 = dma.hbm_to_vmem [thread:$0]  (!%p2167_p7), %s163_s17, 8192, %s165_s21, %s152_s24, %s2065_s6, %s2065_s6, %s2066_s9  }
  0x27   : > { %185 = sbr.rel (%p2133_p8) target bundleno = 745 (0x2e9), region = 32 }
  0x2c   : > { %2035 = dma.done.wait (%p62_p1), [#allocation3], 16384  }
  0x2d   : > { %2037 = vsyncadd (%p62_p1), [#allocation3], 4294950912  ;;  %s2188_s10 = sand.u32 1, %s2052_s13  }
  0x2e   : > { %s1749_s11 = sshll.u32 %s2188_s10, 9  ;;  %s193_s20 = scalar_lea.sflag [#allocation6], %s2188_s10 }
  0x2f   : > { %s2192_s25 = scalar_lea.vmem [#allocation5], %s1749_s11 }
  0x30   : > { %2039 = dma.done.wait (%p2120_p4), %s193_s20, 8192  }
  0x31   : > { %2041 = vsyncadd (%p2120_p4), %s193_s20, 4294959104  ;;  %v327_v0 = vld [vmem:[#allocation2 + $0xf0] sm:$0xff]  ;;  %v325_v2 = vld [vmem:[#allocation2 + $0xe0] sm:$0xff]  ;;  %s1751_s18 = sshll.u32 %s2111_s16, 4  ;;  %s1753_s27 = sshll.u32 %s2111_s16, 7 }
  0x32   : > { %v391_v1 = vld [vmem:[#allocation2 + $0x2f0] sm:$0xff]  ;;  %521 = vmatpush.msra.mxu0 %v327_v0  ;;  %v389_v4 = vld [vmem:[#allocation2 + $0x2e0] sm:$0xff]  ;;  %p2201_p1 = scmp.lt.s32.totalorder %s1751_s18, 63  ;;  %v392_v0 = vld [vmem:[#allocation2 + $0x2f8] sm:$0xff]  ;;  %s1522_s28 = sshra.s32 %s1753_s27, 3 }
  0x33   : > { %651 = vmatpush.msra.mxu2 %v391_v1  ;;  %v359_v3 = vld [vmem:[#allocation2 + $0x1f0] sm:$0xff]  ;;  %v357_v7 = vld [vmem:[#allocation2 + $0x1e0] sm:$0xff]  ;;  %s1764_s29 = sshll.u32 %s1522_s28, 4  ;;  %s1750_s30 = sshll.u32 %s2188_s10, 8 }
  0x34   : > { %v423_v5 = vld [vmem:[#allocation2 + $0x3f0] sm:$0xff]  ;;  %586 = vmatpush.msra.mxu1 %v359_v3  ;;  %522 = vmatpush.msra.mxu0 %v325_v2  ;;  %v421_v9 = vld [vmem:[#allocation2 + $0x3e0] sm:$0xff]  ;;  %s3030_s18 = smov (!%p2201_p1, %s1751_s18), 63  ;;  %v2219_v3 = vld [vmem:[%s2192_s25 + $0x8] sm:$0xff]  ;;  %s2846_s7 = scalar_lea.vmem [#allocation2], %s1764_s29 }
  0x35   : > { %716 = vmatpush.msra.mxu3 %v423_v5  ;;  %v323_v6 = vld [vmem:[#allocation2 + $0xd0] sm:$0xff]  ;;  %652 = vmatpush.msra.mxu2 %v389_v4  ;;  %v321_v11 = vld [vmem:[#allocation2 + $0xc0] sm:$0xff]  ;;  %s1752_s17 = sshll.u32 %s3030_s18, 3  ;;  %v2224_v4 = vld [vmem:[%s2192_s25 + $0x18] sm:$0xff]  ;;  %s2852_s8 = scalar_lea.vmem [#allocation7], %s1750_s30 }
  0x36   : > { %v387_v8 = vld [vmem:[#allocation2 + $0x2d0] sm:$0xff]  ;;  %587 = vmatpush.msra.mxu1 %v357_v7  ;;  %v385_v12 = vld [vmem:[#allocation2 + $0x2c0] sm:$0xff]  ;;  %523 = vmatpush.msra.mxu0 %v323_v6  ;;  %v328_v5 = vld [vmem:[#allocation2 + $0xf8] sm:$0xff]  ;;  %s2229_s24 = scalar_lea.vmem %s2981_s2, %s1752_s17  ;;  %s1766_s6 = sshll.u32 %s2111_s16, 8 }
  0x37   : > { %v355_v10 = vld [vmem:[#allocation2 + $0x1d0] sm:$0xff]  ;;  %717 = vmatpush.msra.mxu3 %v421_v9  ;;  %653 = vmatpush.msra.mxu2 %v387_v8  ;;  %v353_v14 = vld [vmem:[#allocation2 + $0x1c0] sm:$0xff]  ;;  %v424_v6 = vld [vmem:[#allocation2 + $0x3f8] sm:$0xff]  ;;  %s1636_s20 = scalar_lea.hbm %s2982_s3, %s1766_s6  ;;  %s1637_s16 = sshll.u32 %s2852_s8, 4  ;;  %s1638_s16 = int_to_ptr.vmem [resolvable:$true] %s1637_s16 }
  0x38   : > { %v419_v13 = vld [vmem:[#allocation2 + $0x3d0] sm:$0xff]  ;;  %v417_v15 = vld [vmem:[#allocation2 + $0x3c0] sm:$0xff]  ;;  %588 = vmatpush.msra.mxu1 %v355_v10  ;;  %524 = vmatpush.msra.mxu0 %v321_v11  ;;  %v360_v7 = vld [vmem:[#allocation2 + $0x1f8] sm:$0xff]  ;;  %s1624_s18 = scalar_lea.sflag [#allocation4], %s2188_s10 }
  0x39   : > { %718 = vmatpush.msra.mxu3 %v419_v13  ;;  %v319_v16 = vld [vmem:[#allocation2 + $0xb0] sm:$0xff]  ;;  %654 = vmatpush.msra.mxu2 %v385_v12  ;;  %v317_v20 = vld [vmem:[#allocation2 + $0xa0] sm:$0xff]  ;;  %v390_v8 = vld [vmem:[#allocation2 + $0x2e8] sm:$0xff] }
  0x3a   : > { %v383_v17 = vld [vmem:[#allocation2 + $0x2b0] sm:$0xff]  ;;  %589 = vmatpush.msra.mxu1 %v353_v14  ;;  %v381_v21 = vld [vmem:[#allocation2 + $0x2a0] sm:$0xff]  ;;  %525 = vmatpush.msra.mxu0 %v319_v16  ;;  %v326_v9 = vld [vmem:[#allocation2 + $0xe8] sm:$0xff] }
  0x3b   : > { %v351_v18 = vld [vmem:[#allocation2 + $0x1b0] sm:$0xff]  ;;  %719 = vmatpush.msra.mxu3 %v417_v15  ;;  %655 = vmatpush.msra.mxu2 %v383_v17  ;;  %v349_v22 = vld [vmem:[#allocation2 + $0x1a0] sm:$0xff]  ;;  %v422_v10 = vld [vmem:[#allocation2 + $0x3e8] sm:$0xff]  ;;  %v2067_v15 = vmov 0  }
  0x3c   : > { %v415_v19 = vld [vmem:[#allocation2 + $0x3b0] sm:$0xff]  ;;  %v413_v23 = vld [vmem:[#allocation2 + $0x3a0] sm:$0xff]  ;;  %590 = vmatpush.msra.mxu1 %v351_v18  ;;  %526 = vmatpush.msra.mxu0 %v317_v20  ;;  %v358_v11 = vld [vmem:[#allocation2 + $0x1e8] sm:$0xff] }
  0x3d   : > { %720 = vmatpush.msra.mxu3 %v415_v19  ;;  %v315_v24 = vld [vmem:[#allocation2 + $0x90] sm:$0xff]  ;;  %656 = vmatpush.msra.mxu2 %v381_v21  ;;  %v313_v28 = vld [vmem:[#allocation2 + $0x80] sm:$0xff]  ;;  %v388_v16 = vld [vmem:[#allocation2 + $0x2d8] sm:$0xff] }
  0x3e   : > { %v379_v25 = vld [vmem:[#allocation2 + $0x290] sm:$0xff]  ;;  %591 = vmatpush.msra.mxu1 %v349_v22  ;;  %v377_v29 = vld [vmem:[#allocation2 + $0x280] sm:$0xff]  ;;  %527 = vmatpush.msra.mxu0 %v315_v24  ;;  %v324_v17 = vld [vmem:[#allocation2 + $0xd8] sm:$0xff] }
  0x3f   : > { %v347_v26 = vld [vmem:[#allocation2 + $0x190] sm:$0xff]  ;;  %721 = vmatpush.msra.mxu3 %v413_v23  ;;  %657 = vmatpush.msra.mxu2 %v379_v25  ;;  %v345_v30 = vld [vmem:[#allocation2 + $0x180] sm:$0xff]  ;;  %v2242_v18 = vld [vmem:[%s2192_s25 + $0x28] sm:$0xff] }
  0x40   : > { %v411_v27 = vld [vmem:[#allocation2 + $0x390] sm:$0xff]  ;;  %v409_v31 = vld [vmem:[#allocation2 + $0x380] sm:$0xff]  ;;  %592 = vmatpush.msra.mxu1 %v347_v26  ;;  %528 = vmatpush.msra.mxu0 %v313_v28  ;;  %v420_v19 = vld [vmem:[#allocation2 + $0x3d8] sm:$0xff] }
  0x41   : > { %722 = vmatpush.msra.mxu3 %v411_v27  ;;  %v311_v32 = vld [vmem:[#allocation2 + $0x70] sm:$0xff]  ;;  %658 = vmatpush.msra.mxu2 %v377_v29  ;;  %v309_v36 = vld [vmem:[#allocation2 + $0x60] sm:$0xff]  ;;  %v2247_v20 = vld [vmem:[%s2192_s25 + $0x38] sm:$0xff] }
  0x42   : > { %v375_v33 = vld [vmem:[#allocation2 + $0x270] sm:$0xff]  ;;  %593 = vmatpush.msra.mxu1 %v345_v30  ;;  %v373_v37 = vld [vmem:[#allocation2 + $0x260] sm:$0xff]  ;;  %529 = vmatpush.msra.mxu0 %v311_v32  ;;  %v356_v21 = vld [vmem:[#allocation2 + $0x1d8] sm:$0xff] }
  0x43   : > { %v343_v34 = vld [vmem:[#allocation2 + $0x170] sm:$0xff]  ;;  %723 = vmatpush.msra.mxu3 %v409_v31  ;;  %659 = vmatpush.msra.mxu2 %v375_v33  ;;  %v341_v38 = vld [vmem:[#allocation2 + $0x160] sm:$0xff]  ;;  %v386_v22 = vld [vmem:[#allocation2 + $0x2c8] sm:$0xff] }
  0x44   : > { %v407_v35 = vld [vmem:[#allocation2 + $0x370] sm:$0xff]  ;;  %v405_v39 = vld [vmem:[#allocation2 + $0x360] sm:$0xff]  ;;  %594 = vmatpush.msra.mxu1 %v343_v34  ;;  %530 = vmatpush.msra.mxu0 %v309_v36  ;;  %v322_v23 = vld [vmem:[#allocation2 + $0xc8] sm:$0xff] }
  0x45   : > { %724 = vmatpush.msra.mxu3 %v407_v35  ;;  %v307_v40 = vld [vmem:[#allocation2 + $0x50] sm:$0xff]  ;;  %660 = vmatpush.msra.mxu2 %v373_v37  ;;  %v305_v44 = vld [vmem:[#allocation2 + $0x40] sm:$0xff]  ;;  %v418_v24 = vld [vmem:[#allocation2 + $0x3c8] sm:$0xff] }
  0x46   : > { %v371_v41 = vld [vmem:[#allocation2 + $0x250] sm:$0xff]  ;;  %595 = vmatpush.msra.mxu1 %v341_v38  ;;  %v369_v45 = vld [vmem:[#allocation2 + $0x240] sm:$0xff]  ;;  %531 = vmatpush.msra.mxu0 %v307_v40  ;;  %v354_v25 = vld [vmem:[#allocation2 + $0x1c8] sm:$0xff] }
  0x47   : > { %v339_v42 = vld [vmem:[#allocation2 + $0x150] sm:$0xff]  ;;  %725 = vmatpush.msra.mxu3 %v405_v39  ;;  %661 = vmatpush.msra.mxu2 %v371_v41  ;;  %v337_v46 = vld [vmem:[#allocation2 + $0x140] sm:$0xff]  ;;  %v426_v27 = vld [vmem:[%s2229_s24 + $0x8] sm:$0xff] }
  0x48   : > { %v403_v43 = vld [vmem:[#allocation2 + $0x350] sm:$0xff]  ;;  %v401_v47 = vld [vmem:[#allocation2 + $0x340] sm:$0xff]  ;;  %596 = vmatpush.msra.mxu1 %v339_v42  ;;  %532 = vmatpush.msra.mxu0 %v305_v44  ;;  %v384_v28 = vld [vmem:[#allocation2 + $0x2b8] sm:$0xff] }
  0x49   : > { %726 = vmatpush.msra.mxu3 %v403_v43  ;;  %v303_v48 = vld [vmem:[#allocation2 + $0x30] sm:$0xff]  ;;  %662 = vmatpush.msra.mxu2 %v369_v45  ;;  %v301_v52 = vld [vmem:[#allocation2 + $0x20] sm:$0xff]  ;;  %v320_v31 = vld [vmem:[#allocation2 + $0xb8] sm:$0xff] }
  0x4a   : > { %v367_v49 = vld [vmem:[#allocation2 + $0x230] sm:$0xff]  ;;  %597 = vmatpush.msra.mxu1 %v337_v46  ;;  %v365_v53 = vld [vmem:[#allocation2 + $0x220] sm:$0xff]  ;;  %533 = vmatpush.msra.mxu0 %v303_v48  ;;  %v416_v32 = vld [vmem:[#allocation2 + $0x3b8] sm:$0xff] }
  0x4b   : > { %v335_v50 = vld [vmem:[#allocation2 + $0x130] sm:$0xff]  ;;  %727 = vmatpush.msra.mxu3 %v401_v47  ;;  %663 = vmatpush.msra.mxu2 %v367_v49  ;;  %v333_v54 = vld [vmem:[#allocation2 + $0x120] sm:$0xff]  ;;  %v2261_v33 = vld [vmem:[%s2192_s25 + $0x48] sm:$0xff] }
  0x4c   : > { %v399_v51 = vld [vmem:[#allocation2 + $0x330] sm:$0xff]  ;;  %v397_v55 = vld [vmem:[#allocation2 + $0x320] sm:$0xff]  ;;  %598 = vmatpush.msra.mxu1 %v335_v50  ;;  %534 = vmatpush.msra.mxu0 %v301_v52  ;;  %v382_v34 = vld [vmem:[#allocation2 + $0x2a8] sm:$0xff] }
  0x4d   : > { %728 = vmatpush.msra.mxu3 %v399_v51  ;;  %v299_v56 = vld [vmem:[#allocation2 + $0x10] sm:$0xff]  ;;  %664 = vmatpush.msra.mxu2 %v365_v53  ;;  %v297_v60 = vld [vmem:[#allocation2] sm:$0xff]  ;;  %v2266_v35 = vld [vmem:[%s2192_s25 + $0x58] sm:$0xff] }
  0x4e   : > { %v363_v57 = vld [vmem:[#allocation2 + $0x210] sm:$0xff]  ;;  %599 = vmatpush.msra.mxu1 %v333_v54  ;;  %v361_v61 = vld [vmem:[#allocation2 + $0x200] sm:$0xff]  ;;  %535 = vmatpush.msra.mxu0 %v299_v56  ;;  %v352_v36 = vld [vmem:[#allocation2 + $0x1b8] sm:$0xff] }
  0x4f   : > { %v331_v58 = vld [vmem:[#allocation2 + $0x110] sm:$0xff]  ;;  %729 = vmatpush.msra.mxu3 %v397_v55  ;;  %665 = vmatpush.msra.mxu2 %v363_v57  ;;  %v2212_v62 = vld [vmem:[%s2192_s25] sm:$0xff]  ;;  %v318_v37 = vld [vmem:[#allocation2 + $0xa8] sm:$0xff] }
  0x50   : > { %v395_v59 = vld [vmem:[#allocation2 + $0x310] sm:$0xff]  ;;  %600 = vmatpush.msra.mxu1 %v331_v58  ;;  %v329_v1 = vld [vmem:[#allocation2 + $0x100] sm:$0xff]  ;;  %536 = vmatpush.msra.mxu0 %v297_v60  ;;  %v414_v38 = vld [vmem:[#allocation2 + $0x3a8] sm:$0xff] }
  0x51   : > { %v2215_v63 = vld [vmem:[%s2192_s25 + $0x10] sm:$0xff]  ;;  %730 = vmatpush.msra.mxu3 %v395_v59  ;;  %666 = vmatpush.msra.mxu2 %v361_v61  ;;  %v393_v2 = vld [vmem:[#allocation2 + $0x300] sm:$0xff]  ;;  %v350_v39 = vld [vmem:[#allocation2 + $0x1a8] sm:$0xff] }
  0x52   : > { %537 = vmatmul.f32.vlgmr.msra.gmra.mxu0 %v2212_v62  ;;  %667 = vmatmul.f32.vlgmr.msra.gmra.mxu2 %v2215_v63  ;;  %v425_v12 = vld [vmem:[%s2229_s24] sm:$0xff]  ;;  %v2238_v14 = vld [vmem:[%s2192_s25 + $0x30] sm:$0xff]  ;;  %v380_v40 = vld [vmem:[#allocation2 + $0x298] sm:$0xff] }
  0x53   : > { %911 = vmatpush.msrb.mxu2 %v392_v0  ;;  %601 = vmatpush.msra.mxu1 %v329_v1  ;;  %v2235_v13 = vld [vmem:[%s2192_s25 + $0x20] sm:$0xff]  ;;  %v427_v26 = vld [vmem:[%s2229_s24 + $0x10] sm:$0xff]  ;;  %v428_v41 = vld [vmem:[%s2229_s24 + $0x18] sm:$0xff] }
  0x54   : > { %731 = vmatpush.msra.mxu3 %v393_v2  ;;  %602 = vmatmul.f32.vlgmr.msra.gmra.mxu1 %v2219_v3  ;;  %v2254_v29 = vld [vmem:[%s2192_s25 + $0x40] sm:$0xff]  ;;  %v2257_v30 = vld [vmem:[%s2192_s25 + $0x50] sm:$0xff]  ;;  %v316_v42 = vld [vmem:[#allocation2 + $0x98] sm:$0xff] }
  0x55   : > { %732 = vmatmul.f32.vlgmr.msra.gmra.mxu3 %v2224_v4  ;;  %781 = vmatpush.msrb.mxu0 %v328_v5  ;;  %v412_v43 = vld [vmem:[#allocation2 + $0x398] sm:$0xff]  ;;  %v2272_v45 = vld [vmem:[%s2192_s25 + $0x60] sm:$0xff]  ;;  %v2275_v46 = vld [vmem:[%s2192_s25 + $0x70] sm:$0xff] }
  0x56   : > { %976 = vmatpush.msrb.mxu3 %v424_v6  ;;  %846 = vmatpush.msrb.mxu1 %v360_v7  ;;  %v348_v44 = vld [vmem:[#allocation2 + $0x198] sm:$0xff]  ;;  %v2278_v47 = vld [vmem:[%s2192_s25 + $0x68] sm:$0xff]  ;;  %v431_v53 = vld [vmem:[%s2229_s24 + $0x30] sm:$0xff] }
  0x57   : > { %912 = vmatpush.msrb.mxu2 %v390_v8  ;;  %782 = vmatpush.msrb.mxu0 %v326_v9  ;;  %v2283_v48 = vld [vmem:[%s2192_s25 + $0x78] sm:$0xff]  ;;  %v378_v49 = vld [vmem:[#allocation2 + $0x288] sm:$0xff]  ;;  %v2290_v54 = vld [vmem:[%s2192_s25 + $0x80] sm:$0xff] }
  0x58   : > { %977 = vmatpush.msrb.mxu3 %v422_v10  ;;  %1831 = vset.pattern.permute.xlu0 %v2067_v15  ;;  %v314_v50 = vld [vmem:[#allocation2 + $0x88] sm:$0xff]  ;;  %v2293_v55 = vld [vmem:[%s2192_s25 + $0x90] sm:$0xff]  ;;  %v2301_v57 = vld [vmem:[%s2192_s25 + $0x98] sm:$0xff] }
  0x59   : > { %847 = vmatpush.msrb.mxu1 %v358_v11  ;;  %443 = vperm.xlu0 %1831, %v425_v12   ;;  %v410_v51 = vld [vmem:[#allocation2 + $0x388] sm:$0xff]  ;;  %v376_v58 = vld [vmem:[#allocation2 + $0x278] sm:$0xff]  ;;  %v429_v0 = vld [vmem:[%s2229_s24 + $0x20] sm:$0xff] }
  0x5a   : > { %540 = vmatmul.f32.gmra.mxu0 %v2235_v13  ;;  %670 = vmatmul.f32.gmra.mxu2 %v2238_v14  ;;  %v346_v52 = vld [vmem:[#allocation2 + $0x188] sm:$0xff]  ;;  %v312_v59 = vld [vmem:[#allocation2 + $0x78] sm:$0xff]  ;;  %v2308_v2 = vld [vmem:[%s2192_s25 + $0xa0] sm:$0xff] }
  0x5b   : > { %913 = vmatpush.msrb.mxu2 %v388_v16  ;;  %783 = vmatpush.msrb.mxu0 %v324_v17  ;;  %v2296_v56 = vld [vmem:[%s2192_s25 + $0x88] sm:$0xff]  ;;  %v408_v60 = vld [vmem:[#allocation2 + $0x378] sm:$0xff]  ;;  %v2311_v5 = vld [vmem:[%s2192_s25 + $0xb0] sm:$0xff] }
  0x5c   : > { %605 = vmatmul.f32.gmra.mxu1 %v2242_v18  ;;  %978 = vmatpush.msrb.mxu3 %v420_v19  ;;  %v344_v61 = vld [vmem:[#allocation2 + $0x178] sm:$0xff]  ;;  %v2314_v6 = vld [vmem:[%s2192_s25 + $0xa8] sm:$0xff]  ;;  %v2328_v16 = vld [vmem:[%s2192_s25 + $0xd0] sm:$0xff] }
  0x5d   : > { %735 = vmatmul.f32.gmra.mxu3 %v2247_v20  ;;  %848 = vmatpush.msrb.mxu1 %v356_v21  ;;  %v432_v1 = vld [vmem:[%s2229_s24 + $0x38] sm:$0xff]  ;;  %v374_v8 = vld [vmem:[#allocation2 + $0x268] sm:$0xff] }
  0x5e   : > { %914 = vmatpush.msrb.mxu2 %v386_v22  ;;  %784 = vmatpush.msrb.mxu0 %v322_v23  ;;  %v2319_v7 = vld [vmem:[%s2192_s25 + $0xb8] sm:$0xff]  ;;  %v310_v9 = vld [vmem:[#allocation2 + $0x68] sm:$0xff] }
  0x5f   : > { %979 = vmatpush.msrb.mxu3 %v418_v24  ;;  %1832 = vset.pattern.permute.xlu1 %v2067_v15  ;;  %v406_v10 = vld [vmem:[#allocation2 + $0x368] sm:$0xff]  ;;  %v2336_v19 = vld [vmem:[%s2192_s25 + $0xd8] sm:$0xff] }
  0x60   : > { %849 = vmatpush.msrb.mxu1 %v354_v25  ;;  %453 = vperm.xlu1 %1832, %v427_v26   ;;  %v342_v11 = vld [vmem:[#allocation2 + $0x168] sm:$0xff]  ;;  %v372_v21 = vld [vmem:[#allocation2 + $0x258] sm:$0xff]  ;;  %v2342_v26 = vld [vmem:[%s2192_s25 + $0xe0] sm:$0xff] }
  0x61   : > { %448 = vperm.xlu0 %1831, %v426_v27   ;;  %915 = vmatpush.msrb.mxu2 %v384_v28  ;;  %v430_v12 = vld [vmem:[%s2229_s24 + $0x28] sm:$0xff]  ;;  %v308_v22 = vld [vmem:[#allocation2 + $0x58] sm:$0xff]  ;;  %v2345_v27 = vld [vmem:[%s2192_s25 + $0xf0] sm:$0xff] }
  0x62   : > { %543 = vmatmul.f32.gmra.mxu0 %v2254_v29  ;;  %673 = vmatmul.f32.gmra.mxu2 %v2257_v30  ;;  %v2331_v17 = vld [vmem:[%s2192_s25 + $0xc8] sm:$0xff]  ;;  %v404_v23 = vld [vmem:[#allocation2 + $0x358] sm:$0xff] }
  0x63   : > { %785 = vmatpush.msrb.mxu0 %v320_v31  ;;  %980 = vmatpush.msrb.mxu3 %v416_v32  ;;  %v340_v24 = vld [vmem:[#allocation2 + $0x158] sm:$0xff]  ;;  %v434_v25 = vld [vmem:[%s2229_s24 + $0x48] sm:$0xff] }
  0x64   : > { %608 = vmatmul.f32.gmra.mxu1 %v2261_v33  ;;  %916 = vmatpush.msrb.mxu2 %v382_v34  ;;  %v2348_v28 = vld [vmem:[%s2192_s25 + $0xe8] sm:$0xff]  ;;  %v2353_v31 = vld [vmem:[%s2192_s25 + $0xf8] sm:$0xff] }
  0x65   : > { %738 = vmatmul.f32.gmra.mxu3 %v2266_v35  ;;  %850 = vmatpush.msrb.mxu1 %v352_v36  ;;  %v370_v32 = vld [vmem:[#allocation2 + $0x248] sm:$0xff] }
  0x66   : > { %786 = vmatpush.msrb.mxu0 %v318_v37  ;;  %981 = vmatpush.msrb.mxu3 %v414_v38  ;;  %v306_v34 = vld [vmem:[#allocation2 + $0x48] sm:$0xff]  ;;  %v435_v38 = vld [vmem:[%s2229_s24 + $0x50] sm:$0xff] }
  0x67   : > { %851 = vmatpush.msrb.mxu1 %v350_v39  ;;  %917 = vmatpush.msrb.mxu2 %v380_v40  ;;  %v402_v36 = vld [vmem:[#allocation2 + $0x348] sm:$0xff]  ;;  %v2359_v39 = vld [vmem:[%s2192_s25 + $0x100] sm:$0xff]  ;;  %v2362_v40 = vld [vmem:[%s2192_s25 + $0x110] sm:$0xff] }
  0x68   : > { %458 = vperm.xlu1 %1832, %v428_v41   ;;  %787 = vmatpush.msrb.mxu0 %v316_v42  ;;  %v338_v37 = vld [vmem:[#allocation2 + $0x148] sm:$0xff]  ;;  %v2370_v42 = vld [vmem:[%s2192_s25 + $0x118] sm:$0xff] }
  0x69   : > { %982 = vmatpush.msrb.mxu3 %v412_v43  ;;  %852 = vmatpush.msrb.mxu1 %v348_v44  ;;  %v2365_v41 = vld [vmem:[%s2192_s25 + $0x108] sm:$0xff]  ;;  %v368_v43 = vld [vmem:[#allocation2 + $0x238] sm:$0xff] }
  0x6a   : > { %546 = vmatmul.f32.gmra.mxu0 %v2272_v45  ;;  %676 = vmatmul.f32.gmra.mxu2 %v2275_v46  ;;  %v304_v44 = vld [vmem:[#allocation2 + $0x38] sm:$0xff] }
  0x6b   : > { %918 = vmatpush.msrb.mxu2 %v378_v49  ;;  %1833 = vset.pattern.permute.xlu2 %v2067_v15  ;;  %v2325_v15 = vld [vmem:[%s2192_s25 + $0xc0] sm:$0xff]  ;;  %v400_v49 = vld [vmem:[#allocation2 + $0x338] sm:$0xff] }
  0x6c   : > { %611 = vmatmul.f32.gmra.mxu1 %v2278_v47  ;;  %788 = vmatpush.msrb.mxu0 %v314_v50  ;;  %v336_v50 = vld [vmem:[#allocation2 + $0x138] sm:$0xff] }
  0x6d   : > { %741 = vmatmul.f32.gmra.mxu3 %v2283_v48  ;;  %853 = vmatpush.msrb.mxu1 %v346_v52  ;;  %v2376_v52 = vld [vmem:[%s2192_s25 + $0x120] sm:$0xff] }
  0x6e   : > { %983 = vmatpush.msrb.mxu3 %v410_v51  ;;  %473 = vperm.xlu0 %1831, %v431_v53   ;;  %v433_v51 = vld [vmem:[%s2229_s24 + $0x40] sm:$0xff]  ;;  %v2379_v53 = vld [vmem:[%s2192_s25 + $0x130] sm:$0xff] }
  0x6f   : > { %919 = vmatpush.msrb.mxu2 %v376_v58  ;;  %789 = vmatpush.msrb.mxu0 %v312_v59  ;;  %v2382_v58 = vld [vmem:[%s2192_s25 + $0x128] sm:$0xff]  ;;  %v2387_v59 = vld [vmem:[%s2192_s25 + $0x138] sm:$0xff] }
  0x70   : > { %984 = vmatpush.msrb.mxu3 %v408_v60  ;;  %854 = vmatpush.msrb.mxu1 %v344_v61  ;;  %v366_v60 = vld [vmem:[#allocation2 + $0x228] sm:$0xff] }
  0x71   : > { %463 = vperm.xlu2 %1833, %v429_v0   ;;  %478 = vperm.xlu1 %1832, %v432_v1   ;;  %v302_v61 = vld [vmem:[#allocation2 + $0x28] sm:$0xff] }
  0x72   : > { %549 = vmatmul.f32.gmra.mxu0 %v2290_v54  ;;  %679 = vmatmul.f32.gmra.mxu2 %v2293_v55  ;;  %v398_v0 = vld [vmem:[#allocation2 + $0x328] sm:$0xff] }
  0x73   : > { %920 = vmatpush.msrb.mxu2 %v374_v8  ;;  %790 = vmatpush.msrb.mxu0 %v310_v9  ;;  %v334_v1 = vld [vmem:[#allocation2 + $0x128] sm:$0xff]  ;;  %v437_v8 = vld [vmem:[%s2229_s24 + $0x60] sm:$0xff] }
  0x74   : > { %614 = vmatmul.f32.gmra.mxu1 %v2296_v56  ;;  %985 = vmatpush.msrb.mxu3 %v406_v10  ;;  %v2393_v9 = vld [vmem:[%s2192_s25 + $0x140] sm:$0xff]  ;;  %v2396_v10 = vld [vmem:[%s2192_s25 + $0x150] sm:$0xff] }
  0x75   : > { %744 = vmatmul.f32.gmra.mxu3 %v2301_v57  ;;  %855 = vmatpush.msrb.mxu1 %v342_v11  ;;  %v2399_v11 = vld [vmem:[%s2192_s25 + $0x148] sm:$0xff] }
  0x76   : > { %921 = vmatpush.msrb.mxu2 %v372_v21  ;;  %791 = vmatpush.msrb.mxu0 %v308_v22  ;;  %v364_v21 = vld [vmem:[#allocation2 + $0x218] sm:$0xff] }
  0x77   : > { %986 = vmatpush.msrb.mxu3 %v404_v23  ;;  %856 = vmatpush.msrb.mxu1 %v340_v24  ;;  %v300_v22 = vld [vmem:[#allocation2 + $0x18] sm:$0xff] }
  0x78   : > { %488 = vperm.xlu0 %1831, %v434_v25   ;;  %922 = vmatpush.msrb.mxu2 %v370_v32  ;;  %v396_v23 = vld [vmem:[#allocation2 + $0x318] sm:$0xff]  ;;  %v438_v25 = vld [vmem:[%s2229_s24 + $0x68] sm:$0xff]  ;;  %v2410_v32 = vld [vmem:[%s2192_s25 + $0x160] sm:$0xff] }
  0x79   : > { %468 = vperm.xlu2 %1833, %v430_v12   ;;  %792 = vmatpush.msrb.mxu0 %v306_v34  ;;  %v2404_v12 = vld [vmem:[%s2192_s25 + $0x158] sm:$0xff]  ;;  %v2413_v34 = vld [vmem:[%s2192_s25 + $0x170] sm:$0xff] }
  0x7a   : > { %552 = vmatmul.f32.gmra.mxu0 %v2308_v2  ;;  %682 = vmatmul.f32.gmra.mxu2 %v2311_v5  ;;  %v332_v24 = vld [vmem:[#allocation2 + $0x118] sm:$0xff] }
  0x7b   : > { %987 = vmatpush.msrb.mxu3 %v402_v36  ;;  %857 = vmatpush.msrb.mxu1 %v338_v37  ;;  %v2416_v36 = vld [vmem:[%s2192_s25 + $0x168] sm:$0xff]  ;;  %v2421_v37 = vld [vmem:[%s2192_s25 + $0x178] sm:$0xff] }
  0x7c   : > { %617 = vmatmul.f32.gmra.mxu1 %v2314_v6  ;;  %493 = vperm.xlu1 %1832, %v435_v38   ;;  %v362_v38 = vld [vmem:[#allocation2 + $0x208] sm:$0xff] }
  0x7d   : > { %747 = vmatmul.f32.gmra.mxu3 %v2319_v7  ;;  %923 = vmatpush.msrb.mxu2 %v368_v43  ;;  %v298_v43 = vld [vmem:[#allocation2 + $0x8] sm:$0xff] }
  0x7e   : > { %793 = vmatpush.msrb.mxu0 %v304_v44  ;;  %988 = vmatpush.msrb.mxu3 %v400_v49  ;;  %v394_v44 = vld [vmem:[#allocation2 + $0x308] sm:$0xff] }
  0x7f   : > { %858 = vmatpush.msrb.mxu1 %v336_v50  ;;  %924 = vmatpush.msrb.mxu2 %v366_v60  ;;  %v330_v49 = vld [vmem:[#allocation2 + $0x108] sm:$0xff]  ;;  %v436_v50 = vld [vmem:[%s2229_s24 + $0x58] sm:$0xff]  ;;  %v2430_v60 = vld [vmem:[%s2192_s25 + $0x190] sm:$0xff] }
  0x80   : > { %794 = vmatpush.msrb.mxu0 %v302_v61  ;;  %989 = vmatpush.msrb.mxu3 %v398_v0  ;;  %v2433_v61 = vld [vmem:[%s2192_s25 + $0x188] sm:$0xff]  ;;  %v2438_v0 = vld [vmem:[%s2192_s25 + $0x198] sm:$0xff] }
  0x81   : > { %483 = vperm.xlu2 %1833, %v433_v51   ;;  %859 = vmatpush.msrb.mxu1 %v334_v1  ;;  %v2427_v51 = vld [vmem:[%s2192_s25 + $0x180] sm:$0xff]  ;;  %v440_v1 = vld [vmem:[%s2229_s24 + $0x78] sm:$0xff] }
  0x82   : > { %555 = vmatmul.f32.gmra.mxu0 %v2325_v15  ;;  %685 = vmatmul.f32.gmra.mxu2 %v2328_v16 }
  0x83   : > { %503 = vperm.xlu0 %1831, %v437_v8   ;;  %925 = vmatpush.msrb.mxu2 %v364_v21  ;;  %v2444_v8 = vld [vmem:[%s2192_s25 + $0x1a0] sm:$0xff]  ;;  %v2447_v21 = vld [vmem:[%s2192_s25 + $0x1b0] sm:$0xff] }
  0x84   : > { %620 = vmatmul.f32.gmra.mxu1 %v2331_v17  ;;  %795 = vmatpush.msrb.mxu0 %v300_v22  ;;  %3001 = vst [vmem:[#allocation11_spill] sm:$0xff] %v2444_v8  ;;  %v2450_v22 = vld [vmem:[%s2192_s25 + $0x1a8] sm:$0xff] }
  0x85   : > { %750 = vmatmul.f32.gmra.mxu3 %v2336_v19  ;;  %860 = vmatpush.msrb.mxu1 %v332_v24  ;;  %3002 = vst [vmem:[#allocation12_spill] sm:$0xff] %v2447_v21  ;;  %v2460_v24 = vld [vmem:[%s2192_s25 + $0x1c0] sm:$0xff] }
  0x86   : > { %990 = vmatpush.msrb.mxu3 %v396_v23  ;;  %508 = vperm.xlu1 %1832, %v438_v25   ;;  %3003 = vst [vmem:[#allocation13_spill] sm:$0xff] %v2450_v22  ;;  %v2455_v23 = vld [vmem:[%s2192_s25 + $0x1b8] sm:$0xff]  ;;  %v2463_v25 = vld [vmem:[%s2192_s25 + $0x1d0] sm:$0xff] }
  0x87   : > { %926 = vmatpush.msrb.mxu2 %v362_v38  ;;  %796 = vmatpush.msrb.mxu0 %v298_v43  ;;  %3004 = vst [vmem:[#allocation14_spill] sm:$0xff] %v2455_v23  ;;  %v2466_v38 = vld [vmem:[%s2192_s25 + $0x1c8] sm:$0xff]  ;;  %v2471_v43 = vld [vmem:[%s2192_s25 + $0x1d8] sm:$0xff] }
  0x88   : > { %991 = vmatpush.msrb.mxu3 %v394_v44  ;;  %861 = vmatpush.msrb.mxu1 %v330_v49  ;;  %3005 = vst [vmem:[#allocation15_spill] sm:$0xff] %v2460_v24  ;;  %v439_v44 = vld [vmem:[%s2229_s24 + $0x70] sm:$0xff]  ;;  %v2477_v49 = vld [vmem:[%s2192_s25 + $0x1e0] sm:$0xff]  ;;  %s2010_s24 = scalar_lea.hbm %s2982_s3, 1024 }
  0x89   : > { %498 = vperm.xlu2 %1833, %v436_v50   ;;  %3006 = vst [vmem:[#allocation16_spill] sm:$0xff] %v2463_v25  ;;  %v2480_v50 = vld [vmem:[%s2192_s25 + $0x1f0] sm:$0xff] }
  0x8a   : > { %558 = vmatmul.f32.gmra.mxu0 %v2342_v26  ;;  %688 = vmatmul.f32.gmra.mxu2 %v2345_v27  ;;  %3007 = vst [vmem:[#allocation17_spill] sm:$0xff] %v2466_v38 }
  0x8b   : > { %518 = vperm.xlu0 %1831, %v440_v1   ;;  %3008 = vst [vmem:[#allocation18_spill] sm:$0xff] %v2471_v43  ;;  %v2483_v1 = vld [vmem:[%s2192_s25 + $0x1e8] sm:$0xff] }
  0x8c   : > { %623 = vmatmul.f32.gmra.mxu1 %v2348_v28  ;;  %3009 = vst [vmem:[#allocation19_spill] sm:$0xff] %v2477_v49 }
  0x8d   : > { %753 = vmatmul.f32.gmra.mxu3 %v2353_v31  ;;  %3010 = vst [vmem:[#allocation20_spill] sm:$0xff] %v2480_v50 }
  0x8e   : > { %3011 = vst [vmem:[#allocation21_spill] sm:$0xff] %v2483_v1 }
  0x91   : > { %513 = vperm.xlu2 %1833, %v439_v44  }
  0x92   : > { %561 = vmatmul.f32.gmra.mxu0 %v2359_v39  ;;  %691 = vmatmul.f32.gmra.mxu2 %v2362_v40 }
  0x94   : > { %626 = vmatmul.f32.gmra.mxu1 %v2365_v41 }
  0x95   : > { %756 = vmatmul.f32.gmra.mxu3 %v2370_v42 }
  0x9a   : > { %564 = vmatmul.f32.gmra.mxu0 %v2376_v52  ;;  %694 = vmatmul.f32.gmra.mxu2 %v2379_v53 }
  0x9c   : > { %629 = vmatmul.f32.gmra.mxu1 %v2382_v58 }
  0x9d   : > { %759 = vmatmul.f32.gmra.mxu3 %v2387_v59 }
  0xa2   : > { %567 = vmatmul.f32.gmra.mxu0 %v2393_v9  ;;  %697 = vmatmul.f32.gmra.mxu2 %v2396_v10 }
  0xa4   : > { %632 = vmatmul.f32.gmra.mxu1 %v2399_v11 }
  0xa5   : > { %762 = vmatmul.f32.gmra.mxu3 %v2404_v12 }
  0xaa   : > { %570 = vmatmul.f32.gmra.mxu0 %v2410_v32  ;;  %700 = vmatmul.f32.gmra.mxu2 %v2413_v34 }
  0xac   : > { %635 = vmatmul.f32.gmra.mxu1 %v2416_v36 }
  0xad   : > { %765 = vmatmul.f32.gmra.mxu3 %v2421_v37 }
  0xb2   : > { %573 = vmatmul.f32.gmra.mxu0 %v2427_v51  ;;  %703 = vmatmul.f32.gmra.mxu2 %v2430_v60 }
  0xb4   : > { %638 = vmatmul.f32.gmra.mxu1 %v2433_v61 }
  0xb5   : > { %768 = vmatmul.f32.gmra.mxu3 %v2438_v0 }
  0xba   : > { %576 = vmatmul.f32.gmra.mxu0 %v2444_v8  ;;  %706 = vmatmul.f32.gmra.mxu2 %v2447_v21 }
  0xbc   : > { %641 = vmatmul.f32.gmra.mxu1 %v2450_v22 }
  0xbd   : > { %771 = vmatmul.f32.gmra.mxu3 %v2455_v23 }
  0xc2   : > { %579 = vmatmul.f32.gmra.mxu0 %v2460_v24  ;;  %709 = vmatmul.f32.gmra.mxu2 %v2463_v25  ;;  %v2488_v24 = vld [vmem:[%s2192_s25 + $0x1f8] sm:$0xff]  ;;  %s1639_s25 = sshll.u32 %s1636_s20, 4  ;;  %s1640_s25 = int_to_ptr.hbm [resolvable:$true] %s1639_s25 }
  0xc3   : > { %3012 = vst [vmem:[#allocation22_spill] sm:$0xff] %v2488_v24  ;;  %s2004_s23 = sshra.s32 %s1640_s25, 4  ;;  %s2005_s23 = int_to_ptr.hbm [resolvable:$true] %s2004_s23 }
  0xc4   : > { %644 = vmatmul.f32.gmra.mxu1 %v2466_v38  ;;  %s2006_s17 = scalar_lea.hbm %s2005_s23, 256  ;;  %p2011_p2 = scmp.lt.s32.totalorder %s2005_s23, %s2982_s3 }
  0xc5   : > { %774 = vmatmul.f32.gmra.mxu3 %v2471_v43  ;;  %p2007_p4 = scmp.ne.s32.totalorder %s2005_s23, %s2006_s17  ;;  %p2012_p9 = scmp.lt.s32.totalorder %s2010_s24, %s2006_s17 }
  0xc7   : > { %p2008_p8 = pnand %p2007_p4, %p2156_p5  ;;  %p2013_p10 = por %p2012_p9, %p2011_p2 }
  0xc9   : > { %p2009_p7 = pneg %p2008_p8 }
  0xca   : > { %582 = vmatmul.f32.gmra.mxu0 %v2477_v49  ;;  %712 = vmatmul.f32.gmra.mxu2 %v2480_v50 }
  0xcb   : > { %v2490_v25 = vpop.permute.xlu0 %443  ;;  %p2014_p11 = pnand %p2013_p10, %p2009_p7 }
  0xcc   : > { %647 = vmatmul.f32.gmra.mxu1 %v2483_v1 }
  0xcd   : > { %777 = vmatmul.f32.gmra.mxu3 %v2488_v24 }
  0xcf   : > { %v538_v43 = vpop.f32.mrf.mxu0 }
  0xd0   : > { %v539_v38 = vadd.f32 %v538_v43, %v2490_v25 }
  0xd1   : > { %v603_v23 = vpop.f32.mrf.mxu1 }
  0xd2   : > { %v604_v22 = vadd.f32 %v603_v23, %v539_v38  ;;  %797 = vmatmul.f32.vlgmr.msrb.gmra.mxu0 %v2212_v62  ;;  %927 = vmatmul.f32.vlgmr.msrb.gmra.mxu2 %v2215_v63  ;;  %v2506_v62 = vpop.permute.xlu1 %453 }
  0xd3   : > { %v2499_v50 = vpop.permute.xlu0 %448 }
  0xd4   : > { %862 = vmatmul.f32.vlgmr.msrb.gmra.mxu1 %v2219_v3 }
  0xd5   : > { %992 = vmatmul.f32.vlgmr.msrb.gmra.mxu3 %v2224_v4  ;;  %v668_v44 = vpop.f32.mrf.mxu2 }
  0xd6   : > { %v669_v49 = vadd.f32 %v668_v44, %v604_v22 }
  0xd7   : > { %v541_v1 = vpop.f32.mrf.mxu0 }
  0xd8   : > { %v733_v21 = vpop.f32.mrf.mxu3  ;;  %v542_v24 = vadd.f32 %v541_v1, %v2499_v50 }
  0xd9   : > { %v2502_v8 = vadd.f32 %v733_v21, %v669_v49  ;;  %v606_v43 = vpop.f32.mrf.mxu1 }
  0xda   : > { %v607_v23 = vadd.f32 %v606_v43, %v542_v24  ;;  %800 = vmatmul.f32.gmra.mxu0 %v2235_v13  ;;  %930 = vmatmul.f32.gmra.mxu2 %v2238_v14  ;;  %v2517_v14 = vpop.permute.xlu1 %458 }
  0xdc   : > { %865 = vmatmul.f32.gmra.mxu1 %v2242_v18 }
  0xdd   : > { %995 = vmatmul.f32.gmra.mxu3 %v2247_v20  ;;  %v671_v63 = vpop.f32.mrf.mxu2 }
  0xde   : > { %v672_v3 = vadd.f32 %v671_v63, %v607_v23 }
  0xdf   : > { %v544_v4 = vpop.f32.mrf.mxu0 }
  0xe0   : > { %v736_v22 = vpop.f32.mrf.mxu3  ;;  %v545_v38 = vadd.f32 %v544_v4, %v2506_v62 }
  0xe1   : > { %v2511_v21 = vadd.f32 %v736_v22, %v672_v3  ;;  %v609_v49 = vpop.f32.mrf.mxu1 }
  0xe2   : > { %v610_v24 = vadd.f32 %v609_v49, %v545_v38  ;;  %803 = vmatmul.f32.gmra.mxu0 %v2254_v29  ;;  %933 = vmatmul.f32.gmra.mxu2 %v2257_v30  ;;  %v2524_v29 = vpop.permute.xlu2 %463 }
  0xe4   : > { %868 = vmatmul.f32.gmra.mxu1 %v2261_v33 }
  0xe5   : > { %998 = vmatmul.f32.gmra.mxu3 %v2266_v35  ;;  %v674_v13 = vpop.f32.mrf.mxu2 }
  0xe6   : > { %v675_v18 = vadd.f32 %v674_v13, %v610_v24 }
  0xe7   : > { %v547_v20 = vpop.f32.mrf.mxu0 }
  0xe8   : > { %v739_v1 = vpop.f32.mrf.mxu3  ;;  %v548_v44 = vadd.f32 %v547_v20, %v2517_v14 }
  0xe9   : > { %v2520_v43 = vadd.f32 %v739_v1, %v675_v18  ;;  %v612_v23 = vpop.f32.mrf.mxu1 }
  0xea   : > { %v613_v63 = vadd.f32 %v612_v23, %v548_v44  ;;  %806 = vmatmul.f32.gmra.mxu0 %v2272_v45  ;;  %936 = vmatmul.f32.gmra.mxu2 %v2275_v46  ;;  %v2535_v46 = vpop.permute.xlu2 %468 }
  0xec   : > { %871 = vmatmul.f32.gmra.mxu1 %v2278_v47 }
  0xed   : > { %1001 = vmatmul.f32.gmra.mxu3 %v2283_v48  ;;  %v677_v30 = vpop.f32.mrf.mxu2 }
  0xee   : > { %v678_v33 = vadd.f32 %v677_v30, %v613_v63 }
  0xef   : > { %v550_v35 = vpop.f32.mrf.mxu0 }
  0xf0   : > { %v742_v3 = vpop.f32.mrf.mxu3  ;;  %v551_v4 = vadd.f32 %v550_v35, %v2524_v29 }
  0xf1   : > { %v2529_v22 = vadd.f32 %v742_v3, %v678_v33  ;;  %v615_v38 = vpop.f32.mrf.mxu1 }
  0xf2   : > { %v616_v49 = vadd.f32 %v615_v38, %v551_v4  ;;  %809 = vmatmul.f32.gmra.mxu0 %v2290_v54  ;;  %939 = vmatmul.f32.gmra.mxu2 %v2293_v55  ;;  %v2544_v55 = vpop.permute.xlu0 %473 }
  0xf4   : > { %874 = vmatmul.f32.gmra.mxu1 %v2296_v56 }
  0xf5   : > { %1004 = vmatmul.f32.gmra.mxu3 %v2301_v57  ;;  %v680_v45 = vpop.f32.mrf.mxu2 }
  0xf6   : > { %v681_v47 = vadd.f32 %v680_v45, %v616_v49 }
  0xf7   : > { %v553_v48 = vpop.f32.mrf.mxu0 }
  0xf8   : > { %v745_v24 = vpop.f32.mrf.mxu3  ;;  %v554_v13 = vadd.f32 %v553_v48, %v2535_v46 }
  0xf9   : > { %v2538_v18 = vadd.f32 %v745_v24, %v681_v47  ;;  %v618_v20 = vpop.f32.mrf.mxu1 }
  0xfa   : > { %v619_v1 = vadd.f32 %v618_v20, %v554_v13  ;;  %812 = vmatmul.f32.gmra.mxu0 %v2308_v2  ;;  %942 = vmatmul.f32.gmra.mxu2 %v2311_v5  ;;  %v2553_v5 = vpop.permute.xlu1 %478 }
  0xfc   : > { %877 = vmatmul.f32.gmra.mxu1 %v2314_v6 }
  0xfd   : > { %1007 = vmatmul.f32.gmra.mxu3 %v2319_v7  ;;  %v683_v54 = vpop.f32.mrf.mxu2 }
  0xfe   : > { %v684_v56 = vadd.f32 %v683_v54, %v619_v1 }
  0xff   : > { %v556_v57 = vpop.f32.mrf.mxu0 }
 0x100   : > { %v748_v44 = vpop.f32.mrf.mxu3  ;;  %v557_v23 = vadd.f32 %v556_v57, %v2544_v55 }
 0x101   : > { %v2547_v63 = vadd.f32 %v748_v44, %v684_v56  ;;  %v621_v30 = vpop.f32.mrf.mxu1 }
 0x102   : > { %v622_v33 = vadd.f32 %v621_v30, %v557_v23  ;;  %815 = vmatmul.f32.gmra.mxu0 %v2325_v15  ;;  %945 = vmatmul.f32.gmra.mxu2 %v2328_v16  ;;  %v2562_v16 = vpop.permute.xlu2 %483 }
 0x104   : > { %880 = vmatmul.f32.gmra.mxu1 %v2331_v17 }
 0x105   : > { %1010 = vmatmul.f32.gmra.mxu3 %v2336_v19  ;;  %v686_v2 = vpop.f32.mrf.mxu2 }
 0x106   : > { %v687_v6 = vadd.f32 %v686_v2, %v622_v33 }
 0x107   : > { %v559_v7 = vpop.f32.mrf.mxu0 }
 0x108   : > { %v751_v35 = vpop.f32.mrf.mxu3  ;;  %v560_v3 = vadd.f32 %v559_v7, %v2553_v5 }
 0x109   : > { %v2556_v4 = vadd.f32 %v751_v35, %v687_v6  ;;  %v624_v38 = vpop.f32.mrf.mxu1 }
 0x10a   : > { %v625_v49 = vadd.f32 %v624_v38, %v560_v3  ;;  %818 = vmatmul.f32.gmra.mxu0 %v2342_v26  ;;  %948 = vmatmul.f32.gmra.mxu2 %v2345_v27  ;;  %v2571_v27 = vpop.permute.xlu0 %488 }
 0x10c   : > { %883 = vmatmul.f32.gmra.mxu1 %v2348_v28 }
 0x10d   : > { %1013 = vmatmul.f32.gmra.mxu3 %v2353_v31  ;;  %v689_v15 = vpop.f32.mrf.mxu2 }
 0x10e   : > { %v690_v17 = vadd.f32 %v689_v15, %v625_v49 }
 0x10f   : > { %v562_v19 = vpop.f32.mrf.mxu0 }
 0x110   : > { %v754_v45 = vpop.f32.mrf.mxu3  ;;  %v563_v47 = vadd.f32 %v562_v19, %v2562_v16 }
 0x111   : > { %v2565_v48 = vadd.f32 %v754_v45, %v690_v17  ;;  %v627_v24 = vpop.f32.mrf.mxu1 }
 0x112   : > { %v628_v13 = vadd.f32 %v627_v24, %v563_v47  ;;  %821 = vmatmul.f32.gmra.mxu0 %v2359_v39  ;;  %951 = vmatmul.f32.gmra.mxu2 %v2362_v40  ;;  %v2580_v40 = vpop.permute.xlu1 %493 }
 0x114   : > { %886 = vmatmul.f32.gmra.mxu1 %v2365_v41 }
 0x115   : > { %1016 = vmatmul.f32.gmra.mxu3 %v2370_v42  ;;  %v692_v26 = vpop.f32.mrf.mxu2 }
 0x116   : > { %v693_v28 = vadd.f32 %v692_v26, %v628_v13 }
 0x117   : > { %v565_v31 = vpop.f32.mrf.mxu0 }
 0x118   : > { %v757_v20 = vpop.f32.mrf.mxu3  ;;  %v566_v1 = vadd.f32 %v565_v31, %v2571_v27  ;;  %v3013_v31 = vld [vmem:[#allocation11_spill] sm:$0xff] }
 0x119   : > { %v2574_v54 = vadd.f32 %v757_v20, %v693_v28  ;;  %v630_v56 = vpop.f32.mrf.mxu1 }
 0x11a   : > { %v631_v57 = vadd.f32 %v630_v56, %v566_v1  ;;  %824 = vmatmul.f32.gmra.mxu0 %v2376_v52  ;;  %954 = vmatmul.f32.gmra.mxu2 %v2379_v53  ;;  %v2589_v53 = vpop.permute.xlu2 %498 }
 0x11c   : > { %889 = vmatmul.f32.gmra.mxu1 %v2382_v58 }
 0x11d   : > { %1019 = vmatmul.f32.gmra.mxu3 %v2387_v59  ;;  %v695_v39 = vpop.f32.mrf.mxu2 }
 0x11e   : > { %v696_v41 = vadd.f32 %v695_v39, %v631_v57 }
 0x11f   : > { %v568_v42 = vpop.f32.mrf.mxu0 }
 0x120   : > { %v760_v44 = vpop.f32.mrf.mxu3  ;;  %v569_v23 = vadd.f32 %v568_v42, %v2580_v40 }
 0x121   : > { %v2583_v30 = vadd.f32 %v760_v44, %v696_v41  ;;  %v633_v33 = vpop.f32.mrf.mxu1 }
 0x122   : > { %v634_v2 = vadd.f32 %v633_v33, %v569_v23  ;;  %827 = vmatmul.f32.gmra.mxu0 %v2393_v9  ;;  %957 = vmatmul.f32.gmra.mxu2 %v2396_v10  ;;  %v2598_v10 = vpop.permute.xlu0 %503  ;;  %v2616_v20 = vpop.permute.xlu2 %513  ;;  %v3017_v23 = vld [vmem:[#allocation15_spill] sm:$0xff]  ;;  %v3018_v33 = vld [vmem:[#allocation16_spill] sm:$0xff] }
 0x124   : > { %892 = vmatmul.f32.gmra.mxu1 %v2399_v11 }
 0x125   : > { %1022 = vmatmul.f32.gmra.mxu3 %v2404_v12  ;;  %v698_v52 = vpop.f32.mrf.mxu2 }
 0x126   : > { %v699_v58 = vadd.f32 %v698_v52, %v634_v2  ;;  %v3019_v2 = vld [vmem:[#allocation17_spill] sm:$0xff]  ;;  %v3020_v52 = vld [vmem:[#allocation18_spill] sm:$0xff] }
 0x127   : > { %v571_v59 = vpop.f32.mrf.mxu0 }
 0x128   : > { %v763_v6 = vpop.f32.mrf.mxu3  ;;  %v572_v7 = vadd.f32 %v571_v59, %v2589_v53 }
 0x129   : > { %v2592_v35 = vadd.f32 %v763_v6, %v699_v58  ;;  %v636_v3 = vpop.f32.mrf.mxu1 }
 0x12a   : > { %v637_v38 = vadd.f32 %v636_v3, %v572_v7  ;;  %830 = vmatmul.f32.gmra.mxu0 %v2410_v32  ;;  %960 = vmatmul.f32.gmra.mxu2 %v2413_v34  ;;  %v2607_v34 = vpop.permute.xlu1 %508  ;;  %v2625_v59 = vpop.permute.xlu0 %518 }
 0x12c   : > { %895 = vmatmul.f32.gmra.mxu1 %v2416_v36 }
 0x12d   : > { %1025 = vmatmul.f32.gmra.mxu3 %v2421_v37  ;;  %v701_v9 = vpop.f32.mrf.mxu2 }
 0x12e   : > { %v702_v11 = vadd.f32 %v701_v9, %v637_v38 }
 0x12f   : > { %v574_v12 = vpop.f32.mrf.mxu0 }
 0x130   : > { %v766_v49 = vpop.f32.mrf.mxu3  ;;  %v575_v15 = vadd.f32 %v574_v12, %v2598_v10 }
 0x131   : > { %v2601_v17 = vadd.f32 %v766_v49, %v702_v11  ;;  %v639_v19 = vpop.f32.mrf.mxu1  ;;  %v3021_v49 = vld [vmem:[#allocation19_spill] sm:$0xff] }
 0x132   : > { %v640_v45 = vadd.f32 %v639_v19, %v575_v15  ;;  %833 = vmatmul.f32.gmra.mxu0 %v2427_v51  ;;  %963 = vmatmul.f32.gmra.mxu2 %v2430_v60  ;;  %v3014_v51 = vld [vmem:[#allocation12_spill] sm:$0xff]  ;;  %v3015_v60 = vld [vmem:[#allocation13_spill] sm:$0xff] }
 0x133   : > { %v3022_v15 = vld [vmem:[#allocation20_spill] sm:$0xff]  ;;  %v3023_v19 = vld [vmem:[#allocation21_spill] sm:$0xff] }
 0x134   : > { %898 = vmatmul.f32.gmra.mxu1 %v2433_v61  ;;  %v3016_v61 = vld [vmem:[#allocation14_spill] sm:$0xff] }
 0x135   : > { %1028 = vmatmul.f32.gmra.mxu3 %v2438_v0  ;;  %v704_v32 = vpop.f32.mrf.mxu2 }
 0x136   : > { %v705_v36 = vadd.f32 %v704_v32, %v640_v45  ;;  %v3024_v45 = vld [vmem:[#allocation22_spill] sm:$0xff] }
 0x137   : > { %v577_v37 = vpop.f32.mrf.mxu0 }
 0x138   : > { %v769_v47 = vpop.f32.mrf.mxu3  ;;  %v578_v24 = vadd.f32 %v577_v37, %v2607_v34 }
 0x139   : > { %v2610_v13 = vadd.f32 %v769_v47, %v705_v36  ;;  %v642_v26 = vpop.f32.mrf.mxu1 }
 0x13a   : > { %v643_v28 = vadd.f32 %v642_v26, %v578_v24  ;;  %836 = vmatmul.f32.gmra.mxu0 %v3013_v31  ;;  %966 = vmatmul.f32.gmra.mxu2 %v3014_v51 }
 0x13c   : > { %901 = vmatmul.f32.gmra.mxu1 %v3015_v60 }
 0x13d   : > { %1031 = vmatmul.f32.gmra.mxu3 %v3016_v61  ;;  %v707_v0 = vpop.f32.mrf.mxu2 }
 0x13e   : > { %v708_v1 = vadd.f32 %v707_v0, %v643_v28 }
 0x13f   : > { %v580_v56 = vpop.f32.mrf.mxu0 }
 0x140   : > { %v772_v57 = vpop.f32.mrf.mxu3  ;;  %v581_v39 = vadd.f32 %v580_v56, %v2616_v20 }
 0x141   : > { %v2619_v41 = vadd.f32 %v772_v57, %v708_v1  ;;  %v645_v42 = vpop.f32.mrf.mxu1 }
 0x142   : > { %v646_v44 = vadd.f32 %v645_v42, %v581_v39  ;;  %839 = vmatmul.f32.gmra.mxu0 %v3017_v23  ;;  %969 = vmatmul.f32.gmra.mxu2 %v3018_v33 }
 0x144   : > { %904 = vmatmul.f32.gmra.mxu1 %v3019_v2 }
 0x145   : > { %1034 = vmatmul.f32.gmra.mxu3 %v3020_v52  ;;  %v710_v58 = vpop.f32.mrf.mxu2 }
 0x146   : > { %v711_v6 = vadd.f32 %v710_v58, %v646_v44 }
 0x147   : > { %v583_v7 = vpop.f32.mrf.mxu0 }
 0x148   : > { %v775_v3 = vpop.f32.mrf.mxu3  ;;  %v584_v38 = vadd.f32 %v583_v7, %v2625_v59 }
 0x149   : > { %v2628_v9 = vadd.f32 %v775_v3, %v711_v6  ;;  %v648_v11 = vpop.f32.mrf.mxu1 }
 0x14a   : > { %v649_v12 = vadd.f32 %v648_v11, %v584_v38  ;;  %842 = vmatmul.f32.gmra.mxu0 %v3021_v49  ;;  %972 = vmatmul.f32.gmra.mxu2 %v3022_v15 }
 0x14c   : > { %907 = vmatmul.f32.gmra.mxu1 %v3023_v19 }
 0x14d   : > { %1037 = vmatmul.f32.gmra.mxu3 %v3024_v45  ;;  %v713_v32 = vpop.f32.mrf.mxu2 }
 0x14e   : > { %v714_v36 = vadd.f32 %v713_v32, %v649_v12 }
 0x14f   : > { %v798_v37 = vpop.f32.mrf.mxu0 }
 0x150   : > { %v778_v47 = vpop.f32.mrf.mxu3  ;;  %v799_v24 = vadd.f32 %v798_v37, %v2490_v25 }
 0x151   : > { %v2635_v26 = vadd.f32 %v778_v47, %v714_v36  ;;  %v863_v28 = vpop.f32.mrf.mxu1 }
 0x152   : > { %v864_v31 = vadd.f32 %v863_v28, %v799_v24 }
 0x155   : > { %v928_v51 = vpop.f32.mrf.mxu2 }
 0x156   : > { %v929_v60 = vadd.f32 %v928_v51, %v864_v31 }
 0x157   : > { %v801_v61 = vpop.f32.mrf.mxu0 }
 0x158   : > { %v802_v0 = vadd.f32 %v801_v61, %v2499_v50  ;;  %v993_v1 = vpop.f32.mrf.mxu3 }
 0x159   : > { %v2638_v56 = vadd.f32 %v993_v1, %v929_v60  ;;  %v866_v57 = vpop.f32.mrf.mxu1 }
 0x15a   : > { %v867_v39 = vadd.f32 %v866_v57, %v802_v0 }
 0x15b   : > { %v1041_v42 = vmax.f32 %v2502_v8, %v2638_v56 }
 0x15d   : > { %1042 = vmax.xlane.f32.xlu1 %v1041_v42  ;;  %v931_v44 = vpop.f32.mrf.mxu2 }
 0x15e   : > { %v932_v25 = vadd.f32 %v931_v44, %v867_v39 }
 0x15f   : > { %v804_v23 = vpop.f32.mrf.mxu0 }
 0x160   : > { %v805_v33 = vadd.f32 %v804_v23, %v2506_v62  ;;  %v996_v2 = vpop.f32.mrf.mxu3 }
 0x161   : > { %v2643_v52 = vadd.f32 %v996_v2, %v932_v25  ;;  %v869_v58 = vpop.f32.mrf.mxu1 }
 0x162   : > { %v870_v6 = vadd.f32 %v869_v58, %v805_v33 }
 0x163   : > { %v1044_v50 = vmax.f32 %v2511_v21, %v2643_v52 }
 0x165   : > { %1045 = vmax.xlane.f32.xlu2 %v1044_v50  ;;  %v934_v7 = vpop.f32.mrf.mxu2 }
 0x166   : > { %v935_v3 = vadd.f32 %v934_v7, %v870_v6 }
 0x167   : > { %v807_v38 = vpop.f32.mrf.mxu0 }
 0x168   : > { %v808_v11 = vadd.f32 %v807_v38, %v2517_v14  ;;  %v999_v12 = vpop.f32.mrf.mxu3 }
 0x169   : > { %v2648_v49 = vadd.f32 %v999_v12, %v935_v3  ;;  %v872_v15 = vpop.f32.mrf.mxu1 }
 0x16a   : > { %v873_v19 = vadd.f32 %v872_v15, %v808_v11 }
 0x16b   : > { %v1047_v62 = vmax.f32 %v2520_v43, %v2648_v49 }
 0x16d   : > { %1048 = vmax.xlane.f32.xlu0 %v1047_v62  ;;  %v937_v45 = vpop.f32.mrf.mxu2 }
 0x16e   : > { %v938_v32 = vadd.f32 %v937_v45, %v873_v19 }
 0x16f   : > { %v810_v36 = vpop.f32.mrf.mxu0 }
 0x170   : > { %v811_v37 = vadd.f32 %v810_v36, %v2524_v29  ;;  %v1002_v47 = vpop.f32.mrf.mxu3 }
 0x171   : > { %v2653_v24 = vadd.f32 %v1002_v47, %v938_v32  ;;  %v875_v28 = vpop.f32.mrf.mxu1 }
 0x172   : > { %v876_v31 = vadd.f32 %v875_v28, %v811_v37 }
 0x173   : > { %v1050_v14 = vmax.f32 %v2529_v22, %v2653_v24 }
 0x175   : > { %1051 = vmax.xlane.f32.xlu2 %v1050_v14  ;;  %v940_v51 = vpop.f32.mrf.mxu2 }
 0x176   : > { %v941_v60 = vadd.f32 %v940_v51, %v876_v31 }
 0x177   : > { %v813_v61 = vpop.f32.mrf.mxu0 }
 0x178   : > { %v814_v0 = vadd.f32 %v813_v61, %v2535_v46  ;;  %v1005_v1 = vpop.f32.mrf.mxu3 }
 0x179   : > { %v2658_v57 = vadd.f32 %v1005_v1, %v941_v60  ;;  %v878_v39 = vpop.f32.mrf.mxu1 }
 0x17a   : > { %v879_v42 = vadd.f32 %v878_v39, %v814_v0 }
 0x17b   : > { %v1053_v29 = vmax.f32 %v2538_v18, %v2658_v57 }
 0x17d   : > { %1054 = vmax.xlane.f32.xlu1 %v1053_v29  ;;  %v943_v44 = vpop.f32.mrf.mxu2 }
 0x17e   : > { %v944_v25 = vadd.f32 %v943_v44, %v879_v42 }
 0x17f   : > { %v816_v23 = vpop.f32.mrf.mxu0 }
 0x180   : > { %v817_v33 = vadd.f32 %v816_v23, %v2544_v55  ;;  %v1008_v2 = vpop.f32.mrf.mxu3 }
 0x181   : > { %v2663_v58 = vadd.f32 %v1008_v2, %v944_v25  ;;  %v881_v6 = vpop.f32.mrf.mxu1 }
 0x182   : > { %v882_v50 = vadd.f32 %v881_v6, %v817_v33 }
 0x183   : > { %v1056_v46 = vmax.f32 %v2547_v63, %v2663_v58 }
 0x185   : > { %1057 = vmax.xlane.f32.xlu2 %v1056_v46  ;;  %v946_v7 = vpop.f32.mrf.mxu2 }
 0x186   : > { %v947_v3 = vadd.f32 %v946_v7, %v882_v50 }
 0x187   : > { %v819_v38 = vpop.f32.mrf.mxu0 }
 0x188   : > { %v820_v11 = vadd.f32 %v819_v38, %v2553_v5  ;;  %v1011_v12 = vpop.f32.mrf.mxu3 }
 0x189   : > { %v2668_v15 = vadd.f32 %v1011_v12, %v947_v3  ;;  %v884_v19 = vpop.f32.mrf.mxu1 }
 0x18a   : > { %v885_v62 = vadd.f32 %v884_v19, %v820_v11 }
 0x18b   : > { %v1059_v55 = vmax.f32 %v2556_v4, %v2668_v15 }
 0x18d   : > { %1060 = vmax.xlane.f32.xlu0 %v1059_v55  ;;  %v949_v45 = vpop.f32.mrf.mxu2 }
 0x18e   : > { %v950_v32 = vadd.f32 %v949_v45, %v885_v62 }
 0x18f   : > { %v822_v36 = vpop.f32.mrf.mxu0 }
 0x190   : > { %v823_v37 = vadd.f32 %v822_v36, %v2562_v16  ;;  %v1014_v47 = vpop.f32.mrf.mxu3 }
 0x191   : > { %v2673_v28 = vadd.f32 %v1014_v47, %v950_v32  ;;  %v887_v31 = vpop.f32.mrf.mxu1 }
 0x192   : > { %v888_v14 = vadd.f32 %v887_v31, %v823_v37 }
 0x193   : > { %v1062_v5 = vmax.f32 %v2565_v48, %v2673_v28 }
 0x195   : > { %1063 = vmax.xlane.f32.xlu1 %v1062_v5  ;;  %v952_v51 = vpop.f32.mrf.mxu2 }
 0x196   : > { %v953_v60 = vadd.f32 %v952_v51, %v888_v14 }
 0x197   : > { %v825_v61 = vpop.f32.mrf.mxu0 }
 0x198   : > { %v826_v0 = vadd.f32 %v825_v61, %v2571_v27  ;;  %v1017_v1 = vpop.f32.mrf.mxu3 }
 0x199   : > { %v2678_v39 = vadd.f32 %v1017_v1, %v953_v60  ;;  %v890_v42 = vpop.f32.mrf.mxu1 }
 0x19a   : > { %v891_v29 = vadd.f32 %v890_v42, %v826_v0 }
 0x19b   : > { %v1065_v16 = vmax.f32 %v2574_v54, %v2678_v39 }
 0x19d   : > { %1066 = vmax.xlane.f32.xlu2 %v1065_v16  ;;  %v955_v44 = vpop.f32.mrf.mxu2 }
 0x19e   : > { %v956_v25 = vadd.f32 %v955_v44, %v891_v29 }
 0x19f   : > { %v828_v23 = vpop.f32.mrf.mxu0 }
 0x1a0   : > { %v829_v33 = vadd.f32 %v828_v23, %v2580_v40  ;;  %v1020_v2 = vpop.f32.mrf.mxu3 }
 0x1a1   : > { %v2683_v6 = vadd.f32 %v1020_v2, %v956_v25  ;;  %v893_v50 = vpop.f32.mrf.mxu1 }
 0x1a2   : > { %v894_v46 = vadd.f32 %v893_v50, %v829_v33 }
 0x1a3   : > { %v1068_v27 = vmax.f32 %v2583_v30, %v2683_v6 }
 0x1a5   : > { %1069 = vmax.xlane.f32.xlu0 %v1068_v27  ;;  %v958_v7 = vpop.f32.mrf.mxu2 }
 0x1a6   : > { %v959_v3 = vadd.f32 %v958_v7, %v894_v46 }
 0x1a7   : > { %v831_v38 = vpop.f32.mrf.mxu0 }
 0x1a8   : > { %v832_v11 = vadd.f32 %v831_v38, %v2589_v53  ;;  %v1023_v12 = vpop.f32.mrf.mxu3 }
 0x1a9   : > { %v2688_v19 = vadd.f32 %v1023_v12, %v959_v3  ;;  %v896_v62 = vpop.f32.mrf.mxu1 }
 0x1aa   : > { %v897_v55 = vadd.f32 %v896_v62, %v832_v11 }
 0x1ab   : > { %v1071_v40 = vmax.f32 %v2592_v35, %v2688_v19 }
 0x1ad   : > { %1072 = vmax.xlane.f32.xlu1 %v1071_v40  ;;  %v961_v45 = vpop.f32.mrf.mxu2 }
 0x1ae   : > { %v962_v32 = vadd.f32 %v961_v45, %v897_v55 }
 0x1af   : > { %v834_v36 = vpop.f32.mrf.mxu0 }
 0x1b0   : > { %v835_v37 = vadd.f32 %v834_v36, %v2598_v10  ;;  %v1026_v47 = vpop.f32.mrf.mxu3 }
 0x1b1   : > { %v2693_v31 = vadd.f32 %v1026_v47, %v962_v32  ;;  %v899_v14 = vpop.f32.mrf.mxu1 }
 0x1b2   : > { %v900_v5 = vadd.f32 %v899_v14, %v835_v37 }
 0x1b3   : > { %v1074_v53 = vmax.f32 %v2601_v17, %v2693_v31 }
 0x1b5   : > { %1075 = vmax.xlane.f32.xlu2 %v1074_v53  ;;  %v964_v51 = vpop.f32.mrf.mxu2 }
 0x1b6   : > { %v965_v60 = vadd.f32 %v964_v51, %v900_v5 }
 0x1b7   : > { %v837_v61 = vpop.f32.mrf.mxu0 }
 0x1b8   : > { %v838_v0 = vadd.f32 %v837_v61, %v2607_v34  ;;  %v1029_v1 = vpop.f32.mrf.mxu3 }
 0x1b9   : > { %v2698_v42 = vadd.f32 %v1029_v1, %v965_v60  ;;  %v902_v29 = vpop.f32.mrf.mxu1 }
 0x1ba   : > { %v903_v16 = vadd.f32 %v902_v29, %v838_v0 }
 0x1bb   : > { %v1077_v10 = vmax.f32 %v2610_v13, %v2698_v42 }
 0x1bd   : > { %1078 = vmax.xlane.f32.xlu0 %v1077_v10  ;;  %v967_v44 = vpop.f32.mrf.mxu2 }
 0x1be   : > { %v968_v25 = vadd.f32 %v967_v44, %v903_v16 }
 0x1bf   : > { %v840_v23 = vpop.f32.mrf.mxu0 }
 0x1c0   : > { %v841_v33 = vadd.f32 %v840_v23, %v2616_v20  ;;  %v1032_v2 = vpop.f32.mrf.mxu3 }
 0x1c1   : > { %v2703_v50 = vadd.f32 %v1032_v2, %v968_v25  ;;  %v905_v46 = vpop.f32.mrf.mxu1 }
 0x1c2   : > { %v906_v27 = vadd.f32 %v905_v46, %v841_v33 }
 0x1c3   : > { %v1080_v34 = vmax.f32 %v2619_v41, %v2703_v50 }
 0x1c5   : > { %1081 = vmax.xlane.f32.xlu1 %v1080_v34  ;;  %v970_v7 = vpop.f32.mrf.mxu2 }
 0x1c6   : > { %v971_v3 = vadd.f32 %v970_v7, %v906_v27 }
 0x1c7   : > { %v843_v38 = vpop.f32.mrf.mxu0 }
 0x1c8   : > { %v844_v11 = vadd.f32 %v843_v38, %v2625_v59  ;;  %v1035_v12 = vpop.f32.mrf.mxu3 }
 0x1c9   : > { %v2708_v62 = vadd.f32 %v1035_v12, %v971_v3  ;;  %v908_v55 = vpop.f32.mrf.mxu1 }
 0x1ca   : > { %v909_v40 = vadd.f32 %v908_v55, %v844_v11 }
 0x1cb   : > { %v1083_v20 = vmax.f32 %v2628_v9, %v2708_v62 }
 0x1cd   : > { %1084 = vmax.xlane.f32.xlu2 %v1083_v20  ;;  %v973_v45 = vpop.f32.mrf.mxu2 }
 0x1ce   : > { %v974_v32 = vadd.f32 %v973_v45, %v909_v40 }
 0x1d0   : > { %v1038_v36 = vpop.f32.mrf.mxu3  ;;  %v1043_v37 = vpop.xlane.xlu1 %1042 }
 0x1d1   : > { %v2712_v47 = vadd.f32 %v1038_v36, %v974_v32  ;;  %v1089_v14 = vsub.f32 %v2502_v8, %v1043_v37  ;;  %v1090_v53 = vsub.f32 %v2638_v56, %v1043_v37 }
 0x1d3   : > { %v1121_v59 = vmul.f32 1.442695, %v1089_v14  ;;  %v1123_v5 = vmul.f32 1.442695, %v1090_v53  ;;  %v1086_v51 = vmax.f32 %v2635_v26, %v2712_v47 }
 0x1d5   : > { %1834 = vpow2.f32 %v1121_v59  ;;  %1087 = vmax.xlane.f32.xlu0 %v1086_v51 }
 0x1d6   : > { %1836 = vpow2.f32 %v1123_v5 }
 0x1d8   : > { %v1046_v60 = vpop.xlane.xlu2 %1045 }
 0x1d9   : > { %v1091_v61 = vsub.f32 %v2511_v21, %v1046_v60  ;;  %v1092_v0 = vsub.f32 %v2643_v52, %v1046_v60 }
 0x1db   : > { %v2720_v1 = vpop.eup %1834  ;;  %v1125_v29 = vmul.f32 1.442695, %v1091_v61  ;;  %v1127_v10 = vmul.f32 1.442695, %v1092_v0 }
 0x1dc   : > { %v2722_v8 = vpop.eup %1836 }
 0x1dd   : > { %1838 = vpow2.f32 %v1125_v29  ;;  %v1185_v56 = vadd.f32 %v2722_v8, %v2720_v1 }
 0x1de   : > { %1840 = vpow2.f32 %v1127_v10 }
 0x1df   : > { %1186 = vadd.xlane.f32.xlu1 %v1185_v56 }
 0x1e0   : > { %v1049_v16 = vpop.xlane.xlu0 %1048 }
 0x1e1   : > { %v1093_v44 = vsub.f32 %v2520_v43, %v1049_v16  ;;  %v1094_v25 = vsub.f32 %v2648_v49, %v1049_v16 }
 0x1e3   : > { %v2728_v21 = vpop.eup %1838  ;;  %v1129_v52 = vmul.f32 1.442695, %v1093_v44  ;;  %v1131_v23 = vmul.f32 1.442695, %v1094_v25 }
 0x1e4   : > { %v2730_v33 = vpop.eup %1840 }
 0x1e5   : > { %1842 = vpow2.f32 %v1129_v52  ;;  %v1188_v2 = vadd.f32 %v2730_v33, %v2728_v21 }
 0x1e6   : > { %1844 = vpow2.f32 %v1131_v23 }
 0x1e7   : > { %1189 = vadd.xlane.f32.xlu2 %v1188_v2 }
 0x1e8   : > { %v1052_v46 = vpop.xlane.xlu2 %1051 }
 0x1e9   : > { %v1095_v34 = vsub.f32 %v2529_v22, %v1052_v46  ;;  %v1096_v27 = vsub.f32 %v2653_v24, %v1052_v46 }
 0x1eb   : > { %v2736_v43 = vpop.eup %1842  ;;  %v1133_v49 = vmul.f32 1.442695, %v1095_v34  ;;  %v1135_v7 = vmul.f32 1.442695, %v1096_v27 }
 0x1ec   : > { %v2738_v3 = vpop.eup %1844 }
 0x1ed   : > { %1846 = vpow2.f32 %v1133_v49  ;;  %v1191_v38 = vadd.f32 %v2738_v3, %v2736_v43 }
 0x1ee   : > { %1848 = vpow2.f32 %v1135_v7 }
 0x1ef   : > { %1192 = vadd.xlane.f32.xlu0 %v1191_v38 }
 0x1f0   : > { %v1055_v11 = vpop.xlane.xlu1 %1054 }
 0x1f1   : > { %v1097_v12 = vsub.f32 %v2538_v18, %v1055_v11  ;;  %v1098_v55 = vsub.f32 %v2658_v57, %v1055_v11 }
 0x1f3   : > { %v2744_v22 = vpop.eup %1846  ;;  %v1137_v24 = vmul.f32 1.442695, %v1097_v12  ;;  %v1139_v20 = vmul.f32 1.442695, %v1098_v55 }
 0x1f4   : > { %v2746_v40 = vpop.eup %1848 }
 0x1f5   : > { %1850 = vpow2.f32 %v1137_v24  ;;  %v1194_v45 = vadd.f32 %v2746_v40, %v2744_v22 }
 0x1f6   : > { %1852 = vpow2.f32 %v1139_v20 }
 0x1f7   : > { %1195 = vadd.xlane.f32.xlu1 %v1194_v45 }
 0x1f8   : > { %v1058_v32 = vpop.xlane.xlu2 %1057 }
 0x1f9   : > { %v1099_v36 = vsub.f32 %v2547_v63, %v1058_v32  ;;  %v1100_v37 = vsub.f32 %v2663_v58, %v1058_v32 }
 0x1fb   : > { %v2752_v18 = vpop.eup %1850  ;;  %v1141_v57 = vmul.f32 1.442695, %v1099_v36  ;;  %v1143_v14 = vmul.f32 1.442695, %v1100_v37 }
 0x1fc   : > { %v2754_v53 = vpop.eup %1852 }
 0x1fd   : > { %1854 = vpow2.f32 %v1141_v57  ;;  %v1197_v59 = vadd.f32 %v2754_v53, %v2752_v18 }
 0x1fe   : > { %1856 = vpow2.f32 %v1143_v14 }
 0x1ff   : > { %1198 = vadd.xlane.f32.xlu2 %v1197_v59 }
 0x200   : > { %v1061_v5 = vpop.xlane.xlu0 %1060 }
 0x201   : > { %v1101_v51 = vsub.f32 %v2556_v4, %v1061_v5  ;;  %v1102_v60 = vsub.f32 %v2668_v15, %v1061_v5 }
 0x203   : > { %v2760_v63 = vpop.eup %1854  ;;  %v1145_v58 = vmul.f32 1.442695, %v1101_v51  ;;  %v1147_v61 = vmul.f32 1.442695, %v1102_v60 }
 0x204   : > { %v2762_v0 = vpop.eup %1856 }
 0x205   : > { %1858 = vpow2.f32 %v1145_v58  ;;  %v1200_v29 = vadd.f32 %v2762_v0, %v2760_v63 }
 0x206   : > { %1860 = vpow2.f32 %v1147_v61 }
 0x207   : > { %1201 = vadd.xlane.f32.xlu0 %v1200_v29 }
 0x208   : > { %v1064_v10 = vpop.xlane.xlu1 %1063 }
 0x209   : > { %v1103_v56 = vsub.f32 %v2565_v48, %v1064_v10  ;;  %v1104_v16 = vsub.f32 %v2673_v28, %v1064_v10 }
 0x20b   : > { %v2768_v4 = vpop.eup %1858  ;;  %v1149_v15 = vmul.f32 1.442695, %v1103_v56  ;;  %v1151_v44 = vmul.f32 1.442695, %v1104_v16 }
 0x20c   : > { %v2770_v25 = vpop.eup %1860 }
 0x20d   : > { %1862 = vpow2.f32 %v1149_v15  ;;  %v1203_v52 = vadd.f32 %v2770_v25, %v2768_v4 }
 0x20e   : > { %1864 = vpow2.f32 %v1151_v44 }
 0x20f   : > { %1204 = vadd.xlane.f32.xlu1 %v1203_v52 }
 0x210   : > { %v1067_v23 = vpop.xlane.xlu2 %1066 }
 0x211   : > { %v1105_v2 = vsub.f32 %v2574_v54, %v1067_v23  ;;  %v1106_v46 = vsub.f32 %v2678_v39, %v1067_v23 }
 0x213   : > { %v2776_v48 = vpop.eup %1862  ;;  %v1153_v28 = vmul.f32 1.442695, %v1105_v2  ;;  %v1155_v34 = vmul.f32 1.442695, %v1106_v46 }
 0x214   : > { %v2778_v27 = vpop.eup %1864 }
 0x215   : > { %1866 = vpow2.f32 %v1153_v28  ;;  %v1206_v49 = vadd.f32 %v2778_v27, %v2776_v48 }
 0x216   : > { %1868 = vpow2.f32 %v1155_v34 }
 0x217   : > { %1207 = vadd.xlane.f32.xlu2 %v1206_v49 }
 0x218   : > { %v1070_v7 = vpop.xlane.xlu0 %1069 }
 0x219   : > { %v1107_v38 = vsub.f32 %v2583_v30, %v1070_v7  ;;  %v1108_v11 = vsub.f32 %v2683_v6, %v1070_v7 }
 0x21b   : > { %v2784_v54 = vpop.eup %1866  ;;  %v1157_v39 = vmul.f32 1.442695, %v1107_v38  ;;  %v1159_v12 = vmul.f32 1.442695, %v1108_v11 }
 0x21c   : > { %v2786_v55 = vpop.eup %1868 }
 0x21d   : > { %1870 = vpow2.f32 %v1157_v39  ;;  %v1209_v24 = vadd.f32 %v2786_v55, %v2784_v54 }
 0x21e   : > { %1872 = vpow2.f32 %v1159_v12 }
 0x21f   : > { %1210 = vadd.xlane.f32.xlu0 %v1209_v24 }
 0x220   : > { %v1073_v20 = vpop.xlane.xlu1 %1072 }
 0x221   : > { %v1109_v45 = vsub.f32 %v2592_v35, %v1073_v20  ;;  %v1110_v32 = vsub.f32 %v2688_v19, %v1073_v20 }
 0x223   : > { %v2792_v30 = vpop.eup %1870  ;;  %v1161_v6 = vmul.f32 1.442695, %v1109_v45  ;;  %v1163_v36 = vmul.f32 1.442695, %v1110_v32 }
 0x224   : > { %v2794_v37 = vpop.eup %1872 }
 0x225   : > { %1874 = vpow2.f32 %v1161_v6  ;;  %v1212_v57 = vadd.f32 %v2794_v37, %v2792_v30 }
 0x226   : > { %1876 = vpow2.f32 %v1163_v36 }
 0x227   : > { %1213 = vadd.xlane.f32.xlu1 %v1212_v57 }
 0x228   : > { %v1076_v14 = vpop.xlane.xlu2 %1075 }
 0x229   : > { %v1111_v59 = vsub.f32 %v2601_v17, %v1076_v14  ;;  %v1112_v5 = vsub.f32 %v2693_v31, %v1076_v14 }
 0x22b   : > { %v2800_v35 = vpop.eup %1874  ;;  %v1165_v19 = vmul.f32 1.442695, %v1111_v59  ;;  %v1167_v51 = vmul.f32 1.442695, %v1112_v5 }
 0x22c   : > { %v2802_v60 = vpop.eup %1876 }
 0x22d   : > { %1878 = vpow2.f32 %v1165_v19  ;;  %v1215_v58 = vadd.f32 %v2802_v60, %v2800_v35 }
 0x22e   : > { %1880 = vpow2.f32 %v1167_v51 }
 0x22f   : > { %1216 = vadd.xlane.f32.xlu2 %v1215_v58 }
 0x230   : > { %v1079_v61 = vpop.xlane.xlu0 %1078 }
 0x231   : > { %v1113_v29 = vsub.f32 %v2610_v13, %v1079_v61  ;;  %v1114_v10 = vsub.f32 %v2698_v42, %v1079_v61 }
 0x233   : > { %v2808_v17 = vpop.eup %1878  ;;  %v1169_v31 = vmul.f32 1.442695, %v1113_v29  ;;  %v1171_v56 = vmul.f32 1.442695, %v1114_v10 }
 0x234   : > { %v2810_v16 = vpop.eup %1880 }
 0x235   : > { %1882 = vpow2.f32 %v1169_v31  ;;  %v1218_v15 = vadd.f32 %v2810_v16, %v2808_v17 }
 0x236   : > { %1884 = vpow2.f32 %v1171_v56 }
 0x237   : > { %1219 = vadd.xlane.f32.xlu0 %v1218_v15 }
 0x238   : > { %v1082_v44 = vpop.xlane.xlu1 %1081 }
 0x239   : > { %v1115_v52 = vsub.f32 %v2619_v41, %v1082_v44  ;;  %v1116_v23 = vsub.f32 %v2703_v50, %v1082_v44 }
 0x23b   : > { %v2816_v13 = vpop.eup %1882  ;;  %v1173_v42 = vmul.f32 1.442695, %v1115_v52  ;;  %v1175_v2 = vmul.f32 1.442695, %v1116_v23 }
 0x23c   : > { %v2818_v46 = vpop.eup %1884 }
 0x23d   : > { %1886 = vpow2.f32 %v1173_v42  ;;  %v1221_v28 = vadd.f32 %v2818_v46, %v2816_v13 }
 0x23e   : > { %1888 = vpow2.f32 %v1175_v2 }
 0x23f   : > { %1222 = vadd.xlane.f32.xlu1 %v1221_v28 }
 0x240   : > { %v1085_v34 = vpop.xlane.xlu2 %1084 }
 0x241   : > { %v1117_v49 = vsub.f32 %v2628_v9, %v1085_v34  ;;  %v1118_v7 = vsub.f32 %v2708_v62, %v1085_v34 }
 0x243   : > { %v2824_v41 = vpop.eup %1886  ;;  %v1177_v50 = vmul.f32 1.442695, %v1117_v49  ;;  %v1179_v38 = vmul.f32 1.442695, %v1118_v7  ;;  %v1527_v49 = vld [vmem:[%s2846_s7] sm:$0xff]  ;;  %v1528_v7 = vld [vmem:[%s2846_s7 + $0x8] sm:$0xff] }
 0x244   : > { %v2826_v11 = vpop.eup %1888 }
 0x245   : > { %1890 = vpow2.f32 %v1177_v50  ;;  %v1224_v39 = vadd.f32 %v2826_v11, %v2824_v41 }
 0x246   : > { %1892 = vpow2.f32 %v1179_v38 }
 0x247   : > { %1225 = vadd.xlane.f32.xlu2 %v1224_v39 }
 0x248   : > { %v1088_v12 = vpop.xlane.xlu0 %1087 }
 0x249   : > { %v1119_v24 = vsub.f32 %v2635_v26, %v1088_v12  ;;  %v1120_v20 = vsub.f32 %v2712_v47, %v1088_v12 }
 0x24b   : > { %v2832_v9 = vpop.eup %1890  ;;  %v1181_v62 = vmul.f32 1.442695, %v1119_v24  ;;  %v1183_v45 = vmul.f32 1.442695, %v1120_v20 }
 0x24c   : > { %v2834_v32 = vpop.eup %1892 }
 0x24d   : > { %1894 = vpow2.f32 %v1181_v62  ;;  %v1227_v6 = vadd.f32 %v2834_v32, %v2832_v9 }
 0x24e   : > { %1896 = vpow2.f32 %v1183_v45 }
 0x24f   : > { %1228 = vadd.xlane.f32.xlu0 %v1227_v6 }
 0x252   : > { %v1187_v36 = vpop.xlane.xlu1 %1186 }
 0x253   : > { %v2838_v57 = vpop.eup %1894  ;;  %v1233_v14 = vmul.f32 1e-06, %v1187_v36 }
 0x254   : > { %v2840_v26 = vpop.eup %1896 }
 0x255   : > { %v1249_v47 = vadd.f32 1.0, %v1233_v14  ;;  %v1230_v59 = vadd.f32 %v2840_v26, %v2838_v57 }
 0x257   : > { %1898 = vrcp.f32 %v1249_v47  ;;  %1231 = vadd.xlane.f32.xlu1 %v1230_v59  ;;  %v1276_v10 = vand.u32 2147483648, %v1249_v47  ;;  %v1274_v56 = vand.u32 2147483647, %v1249_v47  ;;  %vm1270_vm1 = vweird.f32 %v1249_v47 }
 0x259   : > { %v1277_v42 = vor.u32 1.1754944e-38, %v1276_v10  ;;  %vm1275_vm3 = vcmp.eq.f32.partialorder %v1274_v56, 8.507059e+37 }
 0x25a   : > { %v1190_v5 = vpop.xlane.xlu2 %1189 }
 0x25b   : > { %v1234_v19 = vmul.f32 1e-06, %v1190_v5 }
 0x25d   : > { %v1899_v51 = vpop.eup %1898  ;;  %v1250_v58 = vadd.f32 1.0, %v1234_v19 }
 0x25e   : > { %v1266_v61 = vmul.f32 %v1899_v51, %v1249_v47  ;;  %vm1271_vm0 = vweird.f32 %v1899_v51 }
 0x25f   : > { %1900 = vrcp.f32 %v1250_v58  ;;  %vm1272_vm2 = vmor %vm1270_vm1, %vm1271_vm0  ;;  %v1288_v24 = vand.u32 2147483647, %v1250_v58  ;;  %v1290_v20 = vand.u32 2147483648, %v1250_v58  ;;  %vm1284_vm5 = vweird.f32 %v1250_v58 }
 0x260   : > { %v1267_v29 = vsub.f32 1.0, %v1266_v61  ;;  %v1530_v61 = vld [vmem:[%s2846_s7 + $0x18] sm:$0xff] }
 0x261   : > { %vm1289_vm7 = vcmp.eq.f32.partialorder %v1288_v24, 8.507059e+37 }
 0x262   : > { %v1268_v31 = vmul.f32 %v1899_v51, %v1267_v29  ;;  %v1193_v15 = vpop.xlane.xlu0 %1192 }
 0x263   : > { %v1235_v44 = vmul.f32 1e-06, %v1193_v15 }
 0x264   : > { %v1269_v52 = vadd.f32 %v1899_v51, %v1268_v31 }
 0x265   : > { %v1901_v23 = vpop.eup %1900  ;;  %v1251_v2 = vadd.f32 1.0, %v1235_v44 }
 0x266   : > { %v1273_v28 = vsel %vm1272_vm2, %v1899_v51, %v1269_v52  ;;  %v1280_v34 = vmul.f32 %v1901_v23, %v1250_v58  ;;  %vm1285_vm4 = vweird.f32 %v1901_v23  ;;  %v1529_v51 = vld [vmem:[%s2846_s7 + $0x10] sm:$0xff] }
 0x267   : > { %v1278_v50 = vsel %vm1275_vm3, %v1277_v42, %v1273_v28  ;;  %1902 = vrcp.f32 %v1251_v2  ;;  %vm1286_vm6 = vmor %vm1284_vm5, %vm1285_vm4  ;;  %v1302_v58 = vand.u32 2147483647, %v1251_v2  ;;  %v1304_v15 = vand.u32 2147483648, %v1251_v2 }
 0x268   : > { %v1489_v38 = vmul.f32 %v2720_v1, %v1278_v50  ;;  %v1490_v39 = vmul.f32 %v2722_v8, %v1278_v50  ;;  %v1281_v12 = vsub.f32 1.0, %v1280_v34  ;;  %v1291_v8 = vor.u32 1.1754944e-38, %v1290_v20 }
 0x269   : > { %vm1298_vm9 = vweird.f32 %v1251_v2  ;;  %vm1303_vm11 = vcmp.eq.f32.partialorder %v1302_v58, 8.507059e+37 }
 0x26a   : > { %v1559_v62 = vmul.f32 %v1527_v49, %v1489_v38  ;;  %v1560_v45 = vmul.f32 %v1528_v7, %v1490_v39  ;;  %v1282_v6 = vmul.f32 %v1901_v23, %v1281_v12  ;;  %v1196_v36 = vpop.xlane.xlu1 %1195  ;;  %v1531_v38 = vld [vmem:[%s2846_s7 + $0x20] sm:$0xff]  ;;  %v1532_v39 = vld [vmem:[%s2846_s7 + $0x28] sm:$0xff] }
 0x26b   : > { %v1236_v14 = vmul.f32 1e-06, %v1196_v36 }
 0x26c   : > { %1591 = vst [vmem:[%s2852_s8] sm:$0xff] %v1559_v62  ;;  %v1283_v47 = vadd.f32 %v1901_v23, %v1282_v6 }
 0x26d   : > { %v1903_v1 = vpop.eup %1902  ;;  %1592 = vst [vmem:[%s2852_s8 + $0x8] sm:$0xff] %v1560_v45  ;;  %v1252_v59 = vadd.f32 1.0, %v1236_v14 }
 0x26e   : > { %v1287_v5 = vsel %vm1286_vm6, %v1901_v23, %v1283_v47  ;;  %v1294_v19 = vmul.f32 %v1903_v1, %v1251_v2  ;;  %vm1299_vm8 = vweird.f32 %v1903_v1 }
 0x26f   : > { %v1292_v29 = vsel %vm1289_vm7, %v1291_v8, %v1287_v5  ;;  %1904 = vrcp.f32 %v1252_v59  ;;  %vm1300_vm10 = vmor %vm1298_vm9, %vm1299_vm8  ;;  %v1316_v2 = vand.u32 2147483647, %v1252_v59  ;;  %v1318_v45 = vand.u32 2147483648, %v1252_v59 }
 0x270   : > { %v1491_v10 = vmul.f32 %v2728_v21, %v1292_v29  ;;  %v1492_v31 = vmul.f32 %v2730_v33, %v1292_v29  ;;  %v1295_v56 = vsub.f32 1.0, %v1294_v19  ;;  %v1305_v21 = vor.u32 1.1754944e-38, %v1304_v15  ;;  %v1534_v29 = vld [vmem:[%s2846_s7 + $0x38] sm:$0xff] }
 0x271   : > { %vm1312_vm13 = vweird.f32 %v1252_v59  ;;  %vm1317_vm15 = vcmp.eq.f32.partialorder %v1316_v2, 8.507059e+37 }
 0x272   : > { %v1561_v44 = vmul.f32 %v1529_v51, %v1491_v10  ;;  %v1562_v52 = vmul.f32 %v1530_v61, %v1492_v31  ;;  %v1296_v42 = vmul.f32 %v1903_v1, %v1295_v56  ;;  %v1199_v23 = vpop.xlane.xlu2 %1198  ;;  %v1533_v61 = vld [vmem:[%s2846_s7 + $0x30] sm:$0xff] }
 0x273   : > { %v1237_v28 = vmul.f32 1e-06, %v1199_v23 }
 0x274   : > { %1593 = vst [vmem:[%s2852_s8 + $0x10] sm:$0xff] %v1561_v44  ;;  %v1297_v34 = vadd.f32 %v1903_v1, %v1296_v42 }
 0x275   : > { %v1905_v49 = vpop.eup %1904  ;;  %1594 = vst [vmem:[%s2852_s8 + $0x18] sm:$0xff] %v1562_v52  ;;  %v1253_v7 = vadd.f32 1.0, %v1237_v28 }
 0x276   : > { %v1301_v33 = vsel %vm1300_vm10, %v1903_v1, %v1297_v34  ;;  %v1308_v50 = vmul.f32 %v1905_v49, %v1252_v59  ;;  %vm1313_vm12 = vweird.f32 %v1905_v49 }
 0x277   : > { %v1306_v12 = vsel %vm1303_vm11, %v1305_v21, %v1301_v33  ;;  %1906 = vrcp.f32 %v1253_v7  ;;  %vm1314_vm14 = vmor %vm1312_vm13, %vm1313_vm12  ;;  %v1330_v59 = vand.u32 2147483647, %v1253_v7  ;;  %v1332_v15 = vand.u32 2147483648, %v1253_v7 }
 0x278   : > { %v1493_v24 = vmul.f32 %v2736_v43, %v1306_v12  ;;  %v1494_v20 = vmul.f32 %v2738_v3, %v1306_v12  ;;  %v1309_v62 = vsub.f32 1.0, %v1308_v50  ;;  %v1319_v43 = vor.u32 1.1754944e-38, %v1318_v45  ;;  %v1535_v50 = vld [vmem:[%s2846_s7 + $0x40] sm:$0xff] }
 0x279   : > { %vm1326_vm1 = vweird.f32 %v1253_v7  ;;  %vm1331_vm3 = vcmp.eq.f32.partialorder %v1330_v59, 8.507059e+37 }
 0x27a   : > { %v1563_v6 = vmul.f32 %v1531_v38, %v1493_v24  ;;  %v1564_v36 = vmul.f32 %v1532_v39, %v1494_v20  ;;  %v1310_v14 = vmul.f32 %v1905_v49, %v1309_v62  ;;  %v1202_v47 = vpop.xlane.xlu0 %1201  ;;  %v1536_v38 = vld [vmem:[%s2846_s7 + $0x48] sm:$0xff] }
 0x27b   : > { %v1238_v1 = vmul.f32 1e-06, %v1202_v47 }
 0x27c   : > { %1595 = vst [vmem:[%s2852_s8 + $0x20] sm:$0xff] %v1563_v6  ;;  %v1311_v8 = vadd.f32 %v1905_v49, %v1310_v14 }
 0x27d   : > { %v1907_v5 = vpop.eup %1906  ;;  %1596 = vst [vmem:[%s2852_s8 + $0x28] sm:$0xff] %v1564_v36  ;;  %v1254_v19 = vadd.f32 1.0, %v1238_v1 }
 0x27e   : > { %v1315_v3 = vsel %vm1314_vm14, %v1905_v49, %v1311_v8  ;;  %v1322_v51 = vmul.f32 %v1907_v5, %v1253_v7  ;;  %vm1327_vm0 = vweird.f32 %v1907_v5 }
 0x27f   : > { %v1320_v10 = vsel %vm1317_vm15, %v1319_v43, %v1315_v3  ;;  %1908 = vrcp.f32 %v1254_v19  ;;  %vm1328_vm2 = vmor %vm1326_vm1, %vm1327_vm0  ;;  %v1344_v7 = vand.u32 2147483647, %v1254_v19  ;;  %v1346_v62 = vand.u32 2147483648, %v1254_v19  ;;  %v1537_v43 = vld [vmem:[%s2846_s7 + $0x50] sm:$0xff]  ;;  %v1538_v3 = vld [vmem:[%s2846_s7 + $0x58] sm:$0xff] }
 0x280   : > { %v1495_v31 = vmul.f32 %v2744_v22, %v1320_v10  ;;  %v1496_v56 = vmul.f32 %v2746_v40, %v1320_v10  ;;  %v1323_v58 = vsub.f32 1.0, %v1322_v51  ;;  %v1333_v22 = vor.u32 1.1754944e-38, %v1332_v15 }
 0x281   : > { %vm1340_vm5 = vweird.f32 %v1254_v19  ;;  %vm1345_vm7 = vcmp.eq.f32.partialorder %v1344_v7, 8.507059e+37 }
 0x282   : > { %v1565_v44 = vmul.f32 %v1533_v61, %v1495_v31  ;;  %v1566_v52 = vmul.f32 %v1534_v29, %v1496_v56  ;;  %v1324_v42 = vmul.f32 %v1907_v5, %v1323_v58  ;;  %v1205_v23 = vpop.xlane.xlu1 %1204 }
 0x283   : > { %v1239_v28 = vmul.f32 1e-06, %v1205_v23 }
 0x284   : > { %1597 = vst [vmem:[%s2852_s8 + $0x30] sm:$0xff] %v1565_v44  ;;  %v1325_v34 = vadd.f32 %v1907_v5, %v1324_v42 }
 0x285   : > { %v1909_v49 = vpop.eup %1908  ;;  %1598 = vst [vmem:[%s2852_s8 + $0x38] sm:$0xff] %v1566_v52  ;;  %v1255_v21 = vadd.f32 1.0, %v1239_v28 }
 0x286   : > { %v1329_v40 = vsel %vm1328_vm2, %v1907_v5, %v1325_v34  ;;  %v1336_v33 = vmul.f32 %v1909_v49, %v1254_v19  ;;  %vm1341_vm4 = vweird.f32 %v1909_v49  ;;  %v1539_v34 = vld [vmem:[%s2846_s7 + $0x60] sm:$0xff] }
 0x287   : > { %v1334_v39 = vsel %vm1331_vm3, %v1333_v22, %v1329_v40  ;;  %1910 = vrcp.f32 %v1255_v21  ;;  %vm1342_vm6 = vmor %vm1340_vm5, %vm1341_vm4  ;;  %v1358_v19 = vand.u32 2147483647, %v1255_v21  ;;  %v1360_v31 = vand.u32 2147483648, %v1255_v21 }
 0x288   : > { %v1497_v12 = vmul.f32 %v2752_v18, %v1334_v39  ;;  %v1498_v24 = vmul.f32 %v2754_v53, %v1334_v39  ;;  %v1337_v20 = vsub.f32 1.0, %v1336_v33  ;;  %v1347_v18 = vor.u32 1.1754944e-38, %v1346_v62 }
 0x289   : > { %vm1354_vm9 = vweird.f32 %v1255_v21  ;;  %vm1359_vm11 = vcmp.eq.f32.partialorder %v1358_v19, 8.507059e+37 }
 0x28a   : > { %v1567_v2 = vmul.f32 %v1535_v50, %v1497_v12  ;;  %v1568_v45 = vmul.f32 %v1536_v38, %v1498_v24  ;;  %v1338_v6 = vmul.f32 %v1909_v49, %v1337_v20  ;;  %v1208_v36 = vpop.xlane.xlu2 %1207 }
 0x28b   : > { %v1240_v14 = vmul.f32 1e-06, %v1208_v36  ;;  %v1541_v36 = vld [vmem:[%s2846_s7 + $0x70] sm:$0xff] }
 0x28c   : > { %1599 = vst [vmem:[%s2852_s8 + $0x40] sm:$0xff] %v1567_v2  ;;  %v1339_v47 = vadd.f32 %v1909_v49, %v1338_v6 }
 0x28d   : > { %v1911_v1 = vpop.eup %1910  ;;  %1600 = vst [vmem:[%s2852_s8 + $0x48] sm:$0xff] %v1568_v45  ;;  %v1256_v8 = vadd.f32 1.0, %v1240_v14  ;;  %v1542_v14 = vld [vmem:[%s2846_s7 + $0x78] sm:$0xff] }
 0x28e   : > { %v1343_v53 = vsel %vm1342_vm6, %v1909_v49, %v1339_v47  ;;  %v1350_v5 = vmul.f32 %v1911_v1, %v1255_v21  ;;  %vm1355_vm8 = vweird.f32 %v1911_v1  ;;  %v1540_v49 = vld [vmem:[%s2846_s7 + $0x68] sm:$0xff] }
 0x28f   : > { %v1348_v51 = vsel %vm1345_vm7, %v1347_v18, %v1343_v53  ;;  %1912 = vrcp.f32 %v1256_v8  ;;  %vm1356_vm10 = vmor %vm1354_vm9, %vm1355_vm8  ;;  %v1372_v21 = vand.u32 2147483647, %v1256_v8  ;;  %v1374_v38 = vand.u32 2147483648, %v1256_v8 }
 0x290   : > { %v1499_v61 = vmul.f32 %v2760_v63, %v1348_v51  ;;  %v1500_v29 = vmul.f32 %v2762_v0, %v1348_v51  ;;  %v1351_v10 = vsub.f32 1.0, %v1350_v5  ;;  %v1361_v63 = vor.u32 1.1754944e-38, %v1360_v31 }
 0x291   : > { %vm1368_vm13 = vweird.f32 %v1256_v8  ;;  %vm1373_vm15 = vcmp.eq.f32.partialorder %v1372_v21, 8.507059e+37 }
 0x292   : > { %v1569_v56 = vmul.f32 %v1537_v43, %v1499_v61  ;;  %v1570_v58 = vmul.f32 %v1538_v3, %v1500_v29  ;;  %v1352_v59 = vmul.f32 %v1911_v1, %v1351_v10  ;;  %v1211_v15 = vpop.xlane.xlu0 %1210 }
 0x293   : > { %v1241_v44 = vmul.f32 1e-06, %v1211_v15 }
 0x294   : > { %1601 = vst [vmem:[%s2852_s8 + $0x50] sm:$0xff] %v1569_v56  ;;  %v1353_v52 = vadd.f32 %v1911_v1, %v1352_v59  ;;  %v1544_v59 = vld [vmem:[%s2846_s7 + $0x88] sm:$0xff] }
 0x295   : > { %v1913_v42 = vpop.eup %1912  ;;  %1602 = vst [vmem:[%s2852_s8 + $0x58] sm:$0xff] %v1570_v58  ;;  %v1257_v23 = vadd.f32 1.0, %v1241_v44  ;;  %v1543_v58 = vld [vmem:[%s2846_s7 + $0x80] sm:$0xff] }
 0x296   : > { %v1357_v0 = vsel %vm1356_vm10, %v1911_v1, %v1353_v52  ;;  %v1364_v28 = vmul.f32 %v1913_v42, %v1256_v8  ;;  %vm1369_vm12 = vweird.f32 %v1913_v42 }
 0x297   : > { %v1362_v22 = vsel %vm1359_vm11, %v1361_v63, %v1357_v0  ;;  %1914 = vrcp.f32 %v1257_v23  ;;  %vm1370_vm14 = vmor %vm1368_vm13, %vm1369_vm12  ;;  %v1386_v8 = vand.u32 2147483647, %v1257_v23  ;;  %v1388_v5 = vand.u32 2147483648, %v1257_v23 }
 0x298   : > { %v1501_v40 = vmul.f32 %v2768_v4, %v1362_v22  ;;  %v1502_v33 = vmul.f32 %v2770_v25, %v1362_v22  ;;  %v1365_v50 = vsub.f32 1.0, %v1364_v28  ;;  %v1375_v4 = vor.u32 1.1754944e-38, %v1374_v38  ;;  %v1545_v38 = vld [vmem:[%s2846_s7 + $0x90] sm:$0xff] }
 0x299   : > { %vm1382_vm1 = vweird.f32 %v1257_v23  ;;  %vm1387_vm3 = vcmp.eq.f32.partialorder %v1386_v8, 8.507059e+37  ;;  %v1548_v8 = vld [vmem:[%s2846_s7 + $0xa8] sm:$0xff] }
 0x29a   : > { %v1571_v39 = vmul.f32 %v1539_v34, %v1501_v40  ;;  %v1572_v12 = vmul.f32 %v1540_v49, %v1502_v33  ;;  %v1366_v24 = vmul.f32 %v1913_v42, %v1365_v50  ;;  %v1214_v20 = vpop.xlane.xlu1 %1213 }
 0x29b   : > { %v1242_v7 = vmul.f32 1e-06, %v1214_v20 }
 0x29c   : > { %1603 = vst [vmem:[%s2852_s8 + $0x60] sm:$0xff] %v1571_v39  ;;  %v1367_v62 = vadd.f32 %v1913_v42, %v1366_v24  ;;  %v1546_v39 = vld [vmem:[%s2846_s7 + $0x98] sm:$0xff] }
 0x29d   : > { %v1915_v2 = vpop.eup %1914  ;;  %1604 = vst [vmem:[%s2852_s8 + $0x68] sm:$0xff] %v1572_v12  ;;  %v1258_v45 = vadd.f32 1.0, %v1242_v7 }
 0x29e   : > { %v1371_v25 = vsel %vm1370_vm14, %v1913_v42, %v1367_v62  ;;  %v1378_v6 = vmul.f32 %v1915_v2, %v1257_v23  ;;  %vm1383_vm0 = vweird.f32 %v1915_v2 }
 0x29f   : > { %v1376_v47 = vsel %vm1373_vm15, %v1375_v4, %v1371_v25  ;;  %1916 = vrcp.f32 %v1258_v45  ;;  %vm1384_vm2 = vmor %vm1382_vm1, %vm1383_vm0  ;;  %v1400_v63 = vand.u32 2147483647, %v1258_v45  ;;  %v1402_v23 = vand.u32 2147483648, %v1258_v45 }
 0x2a0   : > { %v1503_v1 = vmul.f32 %v2776_v48, %v1376_v47  ;;  %v1504_v18 = vmul.f32 %v2778_v27, %v1376_v47  ;;  %v1379_v53 = vsub.f32 1.0, %v1378_v6  ;;  %v1389_v48 = vor.u32 1.1754944e-38, %v1388_v5 }
 0x2a1   : > { %vm1396_vm5 = vweird.f32 %v1258_v45  ;;  %vm1401_vm7 = vcmp.eq.f32.partialorder %v1400_v63, 8.507059e+37 }
 0x2a2   : > { %v1573_v43 = vmul.f32 %v1541_v36, %v1503_v1  ;;  %v1574_v3 = vmul.f32 %v1542_v14, %v1504_v18  ;;  %v1380_v51 = vmul.f32 %v1915_v2, %v1379_v53  ;;  %v1217_v61 = vpop.xlane.xlu2 %1216  ;;  %v1547_v53 = vld [vmem:[%s2846_s7 + $0xa0] sm:$0xff] }
 0x2a3   : > { %v1243_v29 = vmul.f32 1e-06, %v1217_v61 }
 0x2a4   : > { %1605 = vst [vmem:[%s2852_s8 + $0x70] sm:$0xff] %v1573_v43  ;;  %v1381_v10 = vadd.f32 %v1915_v2, %v1380_v51 }
 0x2a5   : > { %v1917_v19 = vpop.eup %1916  ;;  %1606 = vst [vmem:[%s2852_s8 + $0x78] sm:$0xff] %v1574_v3  ;;  %v1259_v31 = vadd.f32 1.0, %v1243_v29 }
 0x2a6   : > { %v1385_v27 = vsel %vm1384_vm2, %v1915_v2, %v1381_v10  ;;  %v1392_v56 = vmul.f32 %v1917_v19, %v1258_v45  ;;  %vm1397_vm4 = vweird.f32 %v1917_v19 }
 0x2a7   : > { %v1390_v15 = vsel %vm1387_vm3, %v1389_v48, %v1385_v27  ;;  %1918 = vrcp.f32 %v1259_v31  ;;  %vm1398_vm6 = vmor %vm1396_vm5, %vm1397_vm4  ;;  %v1414_v62 = vand.u32 2147483647, %v1259_v31  ;;  %v1416_v2 = vand.u32 2147483648, %v1259_v31 }
 0x2a8   : > { %v1505_v44 = vmul.f32 %v2784_v54, %v1390_v15  ;;  %v1506_v52 = vmul.f32 %v2786_v55, %v1390_v15  ;;  %v1393_v42 = vsub.f32 1.0, %v1392_v56  ;;  %v1403_v54 = vor.u32 1.1754944e-38, %v1402_v23 }
 0x2a9   : > { %vm1410_vm9 = vweird.f32 %v1259_v31  ;;  %vm1415_vm11 = vcmp.eq.f32.partialorder %v1414_v62, 8.507059e+37 }
 0x2aa   : > { %v1575_v0 = vmul.f32 %v1543_v58, %v1505_v44  ;;  %v1576_v28 = vmul.f32 %v1544_v59, %v1506_v52  ;;  %v1394_v34 = vmul.f32 %v1917_v19, %v1393_v42  ;;  %v1220_v49 = vpop.xlane.xlu0 %1219  ;;  %v1549_v44 = vld [vmem:[%s2846_s7 + $0xb0] sm:$0xff]  ;;  %v1550_v52 = vld [vmem:[%s2846_s7 + $0xb8] sm:$0xff] }
 0x2ab   : > { %v1244_v22 = vmul.f32 1e-06, %v1220_v49 }
 0x2ac   : > { %1607 = vst [vmem:[%s2852_s8 + $0x80] sm:$0xff] %v1575_v0  ;;  %v1395_v40 = vadd.f32 %v1917_v19, %v1394_v34 }
 0x2ad   : > { %v1919_v33 = vpop.eup %1918  ;;  %1608 = vst [vmem:[%s2852_s8 + $0x88] sm:$0xff] %v1576_v28  ;;  %v1260_v50 = vadd.f32 1.0, %v1244_v22 }
 0x2ae   : > { %v1399_v55 = vsel %vm1398_vm6, %v1917_v19, %v1395_v40  ;;  %v1406_v21 = vmul.f32 %v1919_v33, %v1259_v31  ;;  %vm1411_vm8 = vweird.f32 %v1919_v33 }
 0x2af   : > { %v1404_v12 = vsel %vm1401_vm7, %v1403_v54, %v1399_v55  ;;  %1920 = vrcp.f32 %v1260_v50  ;;  %vm1412_vm10 = vmor %vm1410_vm9, %vm1411_vm8  ;;  %v1428_v61 = vand.u32 2147483647, %v1260_v50  ;;  %v1430_v29 = vand.u32 2147483648, %v1260_v50 }
 0x2b0   : > { %v1507_v24 = vmul.f32 %v2792_v30, %v1404_v12  ;;  %v1508_v20 = vmul.f32 %v2794_v37, %v1404_v12  ;;  %v1407_v7 = vsub.f32 1.0, %v1406_v21  ;;  %v1417_v30 = vor.u32 1.1754944e-38, %v1416_v2  ;;  %v1552_v12 = vld [vmem:[%s2846_s7 + $0xc8] sm:$0xff] }
 0x2b1   : > { %vm1424_vm13 = vweird.f32 %v1260_v50  ;;  %vm1429_vm15 = vcmp.eq.f32.partialorder %v1428_v61, 8.507059e+37 }
 0x2b2   : > { %v1577_v4 = vmul.f32 %v1545_v38, %v1507_v24  ;;  %v1578_v45 = vmul.f32 %v1546_v39, %v1508_v20  ;;  %v1408_v25 = vmul.f32 %v1919_v33, %v1407_v7  ;;  %v1223_v6 = vpop.xlane.xlu1 %1222  ;;  %v1551_v39 = vld [vmem:[%s2846_s7 + $0xc0] sm:$0xff] }
 0x2b3   : > { %v1245_v36 = vmul.f32 1e-06, %v1223_v6 }
 0x2b4   : > { %1609 = vst [vmem:[%s2852_s8 + $0x90] sm:$0xff] %v1577_v4  ;;  %v1409_v14 = vadd.f32 %v1919_v33, %v1408_v25 }
 0x2b5   : > { %v1921_v47 = vpop.eup %1920  ;;  %1610 = vst [vmem:[%s2852_s8 + $0x98] sm:$0xff] %v1578_v45  ;;  %v1261_v1 = vadd.f32 1.0, %v1245_v36 }
 0x2b6   : > { %v1413_v37 = vsel %vm1412_vm10, %v1919_v33, %v1409_v14  ;;  %v1420_v18 = vmul.f32 %v1921_v47, %v1260_v50  ;;  %vm1425_vm12 = vweird.f32 %v1921_v47 }
 0x2b7   : > { %v1418_v5 = vsel %vm1415_vm11, %v1417_v30, %v1413_v37  ;;  %1922 = vrcp.f32 %v1261_v1  ;;  %vm1426_vm14 = vmor %vm1424_vm13, %vm1425_vm12  ;;  %v1442_v28 = vand.u32 2147483647, %v1261_v1  ;;  %v1444_v34 = vand.u32 2147483648, %v1261_v1 }
 0x2b8   : > { %v1509_v43 = vmul.f32 %v2800_v35, %v1418_v5  ;;  %v1510_v3 = vmul.f32 %v2802_v60, %v1418_v5  ;;  %v1421_v51 = vsub.f32 1.0, %v1420_v18  ;;  %v1431_v35 = vor.u32 1.1754944e-38, %v1430_v29  ;;  %v1553_v18 = vld [vmem:[%s2846_s7 + $0xd0] sm:$0xff] }
 0x2b9   : > { %vm1438_vm1 = vweird.f32 %v1261_v1  ;;  %vm1443_vm3 = vcmp.eq.f32.partialorder %v1442_v28, 8.507059e+37  ;;  %v1557_v28 = vld [vmem:[%s2846_s7 + $0xf0] sm:$0xff] }
 0x2ba   : > { %v1579_v10 = vmul.f32 %v1547_v53, %v1509_v43  ;;  %v1580_v19 = vmul.f32 %v1548_v8, %v1510_v3  ;;  %v1422_v48 = vmul.f32 %v1921_v47, %v1421_v51  ;;  %v1226_v31 = vpop.xlane.xlu2 %1225  ;;  %v1554_v53 = vld [vmem:[%s2846_s7 + $0xd8] sm:$0xff] }
 0x2bb   : > { %v1246_v27 = vmul.f32 1e-06, %v1226_v31 }
 0x2bc   : > { %1611 = vst [vmem:[%s2852_s8 + $0xa0] sm:$0xff] %v1579_v10  ;;  %v1423_v56 = vadd.f32 %v1921_v47, %v1422_v48 }
 0x2bd   : > { %v1923_v58 = vpop.eup %1922  ;;  %1612 = vst [vmem:[%s2852_s8 + $0xa8] sm:$0xff] %v1580_v19  ;;  %v1262_v59 = vadd.f32 1.0, %v1246_v27 }
 0x2be   : > { %v1427_v60 = vsel %vm1426_vm14, %v1921_v47, %v1423_v56  ;;  %v1434_v15 = vmul.f32 %v1923_v58, %v1261_v1  ;;  %vm1439_vm0 = vweird.f32 %v1923_v58  ;;  %v1555_v56 = vld [vmem:[%s2846_s7 + $0xe0] sm:$0xff] }
 0x2bf   : > { %v1432_v42 = vsel %vm1429_vm15, %v1431_v35, %v1427_v60  ;;  %1924 = vrcp.f32 %v1262_v59  ;;  %vm1440_vm2 = vmor %vm1438_vm1, %vm1439_vm0  ;;  %v1456_v2 = vand.u32 2147483647, %v1262_v59  ;;  %v1458_v4 = vand.u32 2147483648, %v1262_v59 }
 0x2c0   : > { %v1511_v63 = vmul.f32 %v2808_v17, %v1432_v42  ;;  %v1512_v23 = vmul.f32 %v2810_v16, %v1432_v42  ;;  %v1435_v0 = vsub.f32 1.0, %v1434_v15  ;;  %v1445_v17 = vor.u32 1.1754944e-38, %v1444_v34  ;;  %v1558_v34 = vld [vmem:[%s2846_s7 + $0xf8] sm:$0xff] }
 0x2c1   : > { %vm1452_vm5 = vweird.f32 %v1262_v59  ;;  %vm1457_vm7 = vcmp.eq.f32.partialorder %v1456_v2, 8.507059e+37 }
 0x2c2   : > { %v1581_v49 = vmul.f32 %v1549_v44, %v1511_v63  ;;  %v1582_v22 = vmul.f32 %v1550_v52, %v1512_v23  ;;  %v1436_v40 = vmul.f32 %v1923_v58, %v1435_v0  ;;  %v1229_v33 = vpop.xlane.xlu0 %1228 }
 0x2c3   : > { %v1247_v54 = vmul.f32 1e-06, %v1229_v33 }
 0x2c4   : > { %1613 = vst [vmem:[%s2852_s8 + $0xb0] sm:$0xff] %v1581_v49  ;;  %v1437_v50 = vadd.f32 %v1923_v58, %v1436_v40 }
 0x2c5   : > { %v1925_v55 = vpop.eup %1924  ;;  %1614 = vst [vmem:[%s2852_s8 + $0xb8] sm:$0xff] %v1582_v22  ;;  %v1263_v21 = vadd.f32 1.0, %v1247_v54 }
 0x2c6   : > { %v1441_v16 = vsel %vm1440_vm2, %v1923_v58, %v1437_v50  ;;  %v1448_v38 = vmul.f32 %v1925_v55, %v1262_v59  ;;  %vm1453_vm4 = vweird.f32 %v1925_v55  ;;  %v1556_v58 = vld [vmem:[%s2846_s7 + $0xe8] sm:$0xff] }
 0x2c7   : > { %v1446_v24 = vsel %vm1443_vm3, %v1445_v17, %v1441_v16  ;;  %1926 = vrcp.f32 %v1263_v21  ;;  %vm1454_vm6 = vmor %vm1452_vm5, %vm1453_vm4  ;;  %v1470_v51 = vand.u32 2147483647, %v1263_v21  ;;  %v1472_v61 = vand.u32 2147483648, %v1263_v21 }
 0x2c8   : > { %v1513_v20 = vmul.f32 %v2816_v13, %v1446_v24  ;;  %v1514_v7 = vmul.f32 %v2818_v46, %v1446_v24  ;;  %v1449_v62 = vsub.f32 1.0, %v1448_v38  ;;  %v1459_v13 = vor.u32 1.1754944e-38, %v1458_v4 }
 0x2c9   : > { %vm1466_vm9 = vweird.f32 %v1263_v21  ;;  %v1473_v27 = vor.u32 1.1754944e-38, %v1472_v61  ;;  %vm1471_vm11 = vcmp.eq.f32.partialorder %v1470_v51, 8.507059e+37 }
 0x2ca   : > { %v1583_v45 = vmul.f32 %v1551_v39, %v1513_v20  ;;  %v1584_v25 = vmul.f32 %v1552_v12, %v1514_v7  ;;  %v1450_v6 = vmul.f32 %v1925_v55, %v1449_v62  ;;  %v1232_v36 = vpop.xlane.xlu1 %1231 }
 0x2cb   : > { %v1248_v14 = vmul.f32 1e-06, %v1232_v36 }
 0x2cc   : > { %1615 = vst [vmem:[%s2852_s8 + $0xc0] sm:$0xff] %v1583_v45  ;;  %v1451_v47 = vadd.f32 %v1925_v55, %v1450_v6 }
 0x2cd   : > { %v1927_v30 = vpop.eup %1926  ;;  %1616 = vst [vmem:[%s2852_s8 + $0xc8] sm:$0xff] %v1584_v25  ;;  %v1264_v1 = vadd.f32 1.0, %v1248_v14 }
 0x2ce   : > { %v1455_v46 = vsel %vm1454_vm6, %v1925_v55, %v1451_v47  ;;  %v1462_v37 = vmul.f32 %v1927_v30, %v1263_v21  ;;  %vm1467_vm8 = vweird.f32 %v1927_v30 }
 0x2cf   : > { %v1460_v8 = vsel %vm1457_vm7, %v1459_v13, %v1455_v46  ;;  %1928 = vrcp.f32 %v1264_v1  ;;  %vm1468_vm10 = vmor %vm1466_vm9, %vm1467_vm8  ;;  %v1484_v44 = vand.u32 2147483647, %v1264_v1  ;;  %v1486_v52 = vand.u32 2147483648, %v1264_v1 }
 0x2d0   : > { %v1515_v5 = vmul.f32 %v2824_v41, %v1460_v8  ;;  %v1516_v43 = vmul.f32 %v2826_v11, %v1460_v8  ;;  %v1463_v3 = vsub.f32 1.0, %v1462_v37  ;;  %vm1480_vm13 = vweird.f32 %v1264_v1 }
 0x2d1   : > { %vm1485_vm15 = vcmp.eq.f32.partialorder %v1484_v44, 8.507059e+37 }
 0x2d2   : > { %v1585_v29 = vmul.f32 %v1553_v18, %v1515_v5  ;;  %v1586_v10 = vmul.f32 %v1554_v53, %v1516_v43  ;;  %v1464_v19 = vmul.f32 %v1927_v30, %v1463_v3 }
 0x2d4   : > { %1617 = vst [vmem:[%s2852_s8 + $0xd0] sm:$0xff] %v1585_v29  ;;  %v1465_v48 = vadd.f32 %v1927_v30, %v1464_v19 }
 0x2d5   : > { %v1929_v31 = vpop.eup %1928  ;;  %1618 = vst [vmem:[%s2852_s8 + $0xd8] sm:$0xff] %v1586_v10 }
 0x2d6   : > { %v1469_v41 = vsel %vm1468_vm10, %v1927_v30, %v1465_v48  ;;  %v1476_v11 = vmul.f32 %v1929_v31, %v1264_v1  ;;  %vm1481_vm12 = vweird.f32 %v1929_v31 }
 0x2d7   : > { %v1474_v35 = vsel %vm1471_vm11, %v1473_v27, %v1469_v41  ;;  %vm1482_vm14 = vmor %vm1480_vm13, %vm1481_vm12 }
 0x2d8   : > { %v1517_v59 = vmul.f32 %v2832_v9, %v1474_v35  ;;  %v1518_v60 = vmul.f32 %v2834_v32, %v1474_v35  ;;  %v1477_v15 = vsub.f32 1.0, %v1476_v11  ;;  %v1487_v9 = vor.u32 1.1754944e-38, %v1486_v52 }
 0x2da   : > { %v1587_v42 = vmul.f32 %v1555_v56, %v1517_v59  ;;  %v1588_v63 = vmul.f32 %v1556_v58, %v1518_v60  ;;  %v1478_v23 = vmul.f32 %v1929_v31, %v1477_v15 }
 0x2dc   : > { %1619 = vst [vmem:[%s2852_s8 + $0xe0] sm:$0xff] %v1587_v42  ;;  %v1479_v0 = vadd.f32 %v1929_v31, %v1478_v23 }
 0x2dd   : > { %1620 = vst [vmem:[%s2852_s8 + $0xe8] sm:$0xff] %v1588_v63 }
 0x2de   : > { %v1483_v32 = vsel %vm1482_vm14, %v1929_v31, %v1479_v0 }
 0x2df   : > { %v1488_v49 = vsel %vm1485_vm15, %v1487_v9, %v1483_v32 }
 0x2e0   : > { %v1519_v22 = vmul.f32 %v2838_v57, %v1488_v49  ;;  %v1520_v40 = vmul.f32 %v2840_v26, %v1488_v49 }
 0x2e2   : > { %v1589_v33 = vmul.f32 %v1557_v28, %v1519_v22  ;;  %v1590_v54 = vmul.f32 %v1558_v34, %v1520_v40 }
 0x2e4   : > { %1621 = vst [vmem:[%s2852_s8 + $0xf0] sm:$0xff] %v1589_v33 }
 0x2e5   : > { %1622 = vst [vmem:[%s2852_s8 + $0xf8] sm:$0xff] %v1590_v54 }
 0x2e6   : > { %2017 = shalt.err (!%p2014_p11)
}
 0x2e7   : > { %s2068_s10 = smov 256   ;;  %s2069_s29 = smov 16  }
 0x2e8   : > { %1773 = dma.vmem_to_hbm [thread:$0]  (%p2156_p5), %s1638_s16, 4096, %s1640_s25, %s1624_s18, %s2068_s10, %s2068_s10, %s2069_s29  }
 0x2e9 PF: > { %p1790_p12 = scmp.ge.s32.totalorder %s2060_s15, 2  ;;  %s1654_s30 = sand.u32 1, %s2048_s12  }
 0x2ea   : > { %s1655_s7 = scalar_lea.sflag [#allocation4], %s1654_s30 }
 0x2eb   : > { %p1784_p13 = pnand %p1790_p12, %p2125_p6 }
 0x2ed   : > { %p1785_p0 = pneg %p1784_p13 }
 0x2ef   : > { %2043 = dma.done.wait (%p1785_p0), %s1655_s7, 4096  }
 0x2f0   : > { %2045 = vsyncadd (%p1785_p0), %s1655_s7, 4294963200  ;;  %p17_p3 = scmp.ge.s32.totalorder %s2142_s26, 6   ;;  %s3025_s12 = smov %s2052_s13 }
 0x2f1   : > { %s3026_s13 = smov %s2056_s14  ;;  %s3027_s14 = smov %s2152_s4 }
 0x2f2   : > { %s3028_s15 = smov %s2142_s26  ;;  %19 = sbr.rel (!%p17_p3) target bundleno = 6 (0x6), region = 86 }
 0x2f7   :  { %1661 = vsyncpa [#allocation3], 1 }
 0x2f8   :  { %1663 = vsyncpa [#allocation3 + $0x1], 1 }
 0x2f9   :  { %1664 = vsyncpa [#allocation6], 1 }
 0x2fa   :  { %1666 = vsyncpa [#allocation6 + $0x1], 1 }
 0x2fb   :  { %1667 = vsyncpa [#allocation4], 1 }
 0x2fc   :  { %1669 = vsyncpa [#allocation4 + $0x1], 1 }

</bundles_post_ra>
